<compile_context>
chip_gen: v7x
topology: tpu7x:2x2x1
jax: 0.10.0
libtpu: 0.0.40
codegen_flags: <defaults>
</compile_context>

<pallas_src>
import functools
import math

import jax
import jax.numpy as jnp
from jax.experimental import pallas as pl
from jax.experimental.pallas import tpu as pltpu

LN_EPS = 1e-5
NEG_INF = -1e9  # additive key-padding mask value (stays on the f32 score path)


# ----------------------------- kernel -----------------------------------------

def _layer_norm(x, gamma, beta):
    mu = jnp.mean(x, axis=-1, keepdims=True)
    var = jnp.mean((x - mu) ** 2, axis=-1, keepdims=True)
    return (x - mu) * jax.lax.rsqrt(var + LN_EPS) * gamma + beta


def encoder_stack_kernel(x_emb_ref, keep_ref, amask_ref, eg_ref, eb_ref,
                         wqkv_ref, bqkv_ref, wo_ref, bo_ref,
                         g1_ref, be1_ref, w1_ref, b1_ref, w2_ref, b2_ref,
                         g2_ref, be2_ref,
                         o_ref, ctx_ref,
                         *, num_heads, head_dim, ffn_chunk):
    l = pl.program_id(1)
    H = num_heads * head_dim

    # Layer 0: seed the VMEM-resident residual stream (held in o_ref, whose block
    # index is constant over the L axis) with LayerNorm(embeddings) * keep-mask.
    @pl.when(l == 0)
    def _():
        x0 = _layer_norm(x_emb_ref[...], eg_ref[...], eb_ref[...]) * keep_ref[...]
        o_ref[...] = x0.astype(o_ref.dtype)

    x = o_ref[...]                 # (T, H) f32, resident in VMEM across layers
    amask = amask_ref[...]         # (1, T) additive key-padding mask (0 / NEG_INF)

    # --- fused QKV projection: one full-width bf16 matmul on the MXU.
    # 1/sqrt(head_dim) is pre-folded into the Q columns of wqkv/bqkv.
    xb = x.astype(jnp.bfloat16)
    qkv = jnp.dot(xb, wqkv_ref[...], preferred_element_type=jnp.float32) + bqkv_ref[...]
    q = qkv[:, 0 * H:1 * H].astype(jnp.bfloat16)
    k = qkv[:, 1 * H:2 * H].astype(jnp.bfloat16)
    v = qkv[:, 2 * H:3 * H].astype(jnp.bfloat16)

    # trans_b matmul: contract last dims of q and k (no explicit transpose).
    dn_nt = (((1,), (1,)), ((), ()))

    # Per-head score/softmax/context; each head's context is written into the
    # bf16 VMEM slab so Wo is a single full-width matmul afterwards.
    for h in range(num_heads):
        sl = slice(h * head_dim, (h + 1) * head_dim)
        s = jax.lax.dot_general(q[:, sl], k[:, sl], dn_nt,
                                preferred_element_type=jnp.float32) + amask   # (T,T) f32
        s = s - jnp.max(s, axis=-1, keepdims=True)
        p = jnp.exp(s)
        p = p * pl.reciprocal(jnp.sum(p, axis=-1, keepdims=True), approx=True)
        ctx = jnp.dot(p.astype(jnp.bfloat16), v[:, sl],
                      preferred_element_type=jnp.float32)                      # (T, hd)
        ctx_ref[:, sl] = ctx.astype(ctx_ref.dtype)

    # single full-width output projection from the context slab
    attn = jnp.dot(ctx_ref[...], wo_ref[...],
                   preferred_element_type=jnp.float32) + bo_ref[...]

    # residual + post-LN (f32)
    x1 = _layer_norm(x + attn, g1_ref[...], be1_ref[...])

    # --- feed-forward, tiled over T rows so the (T,F) f32 GELU intermediate is
    # bounded; GELU is exact (erf-based), matching torch F.gelu.
    T = x1.shape[0]
    inv_sqrt2 = 1.0 / math.sqrt(2.0)
    for r0 in range(0, T, ffn_chunk):
        r1 = min(r0 + ffn_chunk, T)
        xc = x1[r0:r1]
        h1 = jnp.dot(xc.astype(jnp.bfloat16), w1_ref[...],
                     preferred_element_type=jnp.float32) + b1_ref[...]
        h1 = 0.5 * h1 * (1.0 + jax.lax.erf(h1 * inv_sqrt2))
        h2 = jnp.dot(h1.astype(jnp.bfloat16), w2_ref[...],
                     preferred_element_type=jnp.float32) + b2_ref[...]
        o_ref[r0:r1, :] = _layer_norm(xc + h2, g2_ref[...], be2_ref[...]).astype(o_ref.dtype)


# ----------------------------- pallas_call wrapper -----------------------------

def _vmem_limit_bytes(T, H, F, ffn_chunk):
    f32, bf16 = 4, 2
    # pipelined blocks are double-buffered: one layer's packed weights + the
    # per-sequence activation blocks (x_emb / keep / amask / output).
    w_layer = (3 * H * H + H * H + H * F + F * H) * bf16 + (7 * H + F) * f32
    per_seq = (2 * T * H + 2 * T) * f32
    pipelined = 2 * (w_layer + per_seq)
    # kernel-internal activations are single-buffered.
    acts = (T * 3 * H) * (f32 + bf16) + 3 * T * T * f32 \
        + T * H * (3 * f32 + bf16) + ffn_chunk * F * (f32 + bf16)
    need = pipelined + acts + (4 << 20)
    try:
        cap = getattr(pltpu.get_tpu_info(), "vmem_capacity_bytes", None)
    except Exception:
        cap = None
    if not cap:
        cap = 64 << 20   # conservative fallback: v7x per-TensorCore physical VMEM
    return int(min(max(need, 16 << 20), int(0.8 * cap)))


def roberta_encoder_pallas(x_emb, keep, amask, emb_g, emb_b, stacked, num_heads):
    """x_emb (B,T,H) f32, keep (B,T,1) f32, amask (B,1,T) f32, stacked per-layer
    weights with leading L axis. Returns final hidden states (B,T,H) f32."""
    B, T, H = x_emb.shape
    L = stacked["wqkv"].shape[0]
    F = stacked["w1"].shape[2]
    head_dim = H // num_heads
    ffn_chunk = min(T, 256)

    def wspec(shape):   # per-layer stacked weight: index only over L
        return pl.BlockSpec((None,) + shape, lambda b, l: (l,) + (0,) * len(shape))

    def cspec(shape):   # truly constant tensor
        return pl.BlockSpec(shape, lambda b, l: (0,) * len(shape))

    kernel = functools.partial(encoder_stack_kernel, num_heads=num_heads,
                               head_dim=head_dim, ffn_chunk=ffn_chunk)

    return pl.pallas_call(
        kernel,
        out_shape=jax.ShapeDtypeStruct((B, T, H), jnp.float32),
        grid=(B, L),   # L innermost ("arbitrary"); x stays resident over L
        in_specs=[
            pl.BlockSpec((None, T, H), lambda b, l: (b, 0, 0)),   # x_emb
            pl.BlockSpec((None, T, 1), lambda b, l: (b, 0, 0)),   # keep mask
            pl.BlockSpec((None, 1, T), lambda b, l: (b, 0, 0)),   # additive key-padding mask
            cspec((1, H)), cspec((1, H)),                          # emb LN gamma/beta
            wspec((H, 3 * H)), wspec((1, 3 * H)),                  # packed Wqkv (bf16), bqkv
            wspec((H, H)), wspec((1, H)),                          # Wo (bf16), bo
            wspec((1, H)), wspec((1, H)),                          # LN1 gamma/beta
            wspec((H, F)), wspec((1, F)),                          # W1 (bf16), b1
            wspec((F, H)), wspec((1, H)),                          # W2 (bf16), b2
            wspec((1, H)), wspec((1, H)),                          # LN2 gamma/beta
        ],
        out_specs=pl.BlockSpec((None, T, H), lambda b, l: (b, 0, 0)),
        scratch_shapes=[pltpu.VMEM((T, H), jnp.bfloat16)],         # per-head context slab
        compiler_params=pltpu.CompilerParams(
            dimension_semantics=("parallel", "arbitrary"),
            vmem_limit_bytes=_vmem_limit_bytes(T, H, F, ffn_chunk)),
    )(x_emb, keep, amask, emb_g, emb_b,
      stacked["wqkv"], stacked["bqkv"], stacked["wo"], stacked["bo"],
      stacked["ln1_g"], stacked["ln1_b"], stacked["w1"], stacked["b1"],
      stacked["w2"], stacked["b2"], stacked["ln2_g"], stacked["ln2_b"])


# ----------------------------- model glue --------------------------------------

def init_params(key, *, vocab_size, pad_id, num_layers, embed_dim, ffn_dim,
                num_heads, max_positions):
    def nrm(k, shape, std=0.02):
        return (std * jax.random.normal(k, shape)).astype(jnp.float32)

    keys = jax.random.split(key, 2 + num_layers)
    tok_emb = nrm(keys[0], (vocab_size, embed_dim))
    tok_emb = tok_emb.at[pad_id].set(0.0)                       # padding_idx row = 0
    pos_emb = nrm(keys[1], (max_positions + pad_id + 1, embed_dim))
    pos_emb = pos_emb.at[pad_id].set(0.0)

    layers = []
    for li in range(num_layers):
        ks = jax.random.split(keys[2 + li], 8)
        H, F = embed_dim, ffn_dim
        layers.append(dict(
            wq=nrm(ks[0], (H, H)), bq=jnp.zeros((1, H), jnp.float32),
            wk=nrm(ks[1], (H, H)), bk=jnp.zeros((1, H), jnp.float32),
            wv=nrm(ks[2], (H, H)), bv=jnp.zeros((1, H), jnp.float32),
            wo=nrm(ks[3], (H, H)), bo=jnp.zeros((1, H), jnp.float32),
            ln1_g=jnp.ones((1, H), jnp.float32), ln1_b=jnp.zeros((1, H), jnp.float32),
            w1=nrm(ks[4], (H, F)), b1=jnp.zeros((1, F), jnp.float32),
            w2=nrm(ks[5], (F, H)), b2=jnp.zeros((1, H), jnp.float32),
            ln2_g=jnp.ones((1, H), jnp.float32), ln2_b=jnp.zeros((1, H), jnp.float32),
        ))
    return dict(
        pad=pad_id, tok_emb=tok_emb, pos_emb=pos_emb,
        emb_ln_g=jnp.ones((1, embed_dim), jnp.float32),
        emb_ln_b=jnp.zeros((1, embed_dim), jnp.float32),
        layers=layers, num_heads=num_heads,
    )


def pack_params(params):
    """Kernel-friendly layout: per-layer weights stacked on a leading L axis,
    QKV packed into one (H,3H) bf16 matrix with 1/sqrt(head_dim) folded into
    the Q columns."""
    nh = params["num_heads"]
    H = params["tok_emb"].shape[1]
    scale = (H // nh) ** -0.5
    lps = params["layers"]

    def stack(fn, dtype=None):
        a = jnp.stack([fn(lp) for lp in lps], axis=0)
        return a.astype(dtype) if dtype is not None else a

    stacked = dict(
        wqkv=stack(lambda lp: jnp.concatenate(
            [lp["wq"] * scale, lp["wk"], lp["wv"]], axis=1), jnp.bfloat16),
        bqkv=stack(lambda lp: jnp.concatenate(
            [lp["bq"] * scale, lp["bk"], lp["bv"]], axis=1)),
        wo=stack(lambda lp: lp["wo"], jnp.bfloat16),
        bo=stack(lambda lp: lp["bo"]),
        ln1_g=stack(lambda lp: lp["ln1_g"]), ln1_b=stack(lambda lp: lp["ln1_b"]),
        w1=stack(lambda lp: lp["w1"], jnp.bfloat16), b1=stack(lambda lp: lp["b1"]),
        w2=stack(lambda lp: lp["w2"], jnp.bfloat16), b2=stack(lambda lp: lp["b2"]),
        ln2_g=stack(lambda lp: lp["ln2_g"]), ln2_b=stack(lambda lp: lp["ln2_b"]),
    )
    return dict(pad=params["pad"], tok_emb=params["tok_emb"], pos_emb=params["pos_emb"],
                emb_ln_g=params["emb_ln_g"], emb_ln_b=params["emb_ln_b"],
                stacked=stacked, num_heads=params["num_heads"])


def roberta_encoder_forward(tokens, packed):
    pad = packed["pad"]
    nonpad = (tokens != pad)
    # fairseq utils.make_positions
    positions = jnp.cumsum(nonpad.astype(jnp.int32), axis=1) * nonpad.astype(jnp.int32) + pad

    # embedding gathers stay in plain JAX (glue); everything else is one kernel.
    x_emb = packed["tok_emb"][tokens] + packed["pos_emb"][positions]           # (B, T, H)
    keep = nonpad.astype(jnp.float32)[:, :, None]                              # (B, T, 1)
    amask = jnp.where(nonpad, 0.0, NEG_INF).astype(jnp.float32)[:, None, :]    # (B, 1, T)

    return roberta_encoder_pallas(x_emb, keep, amask,
                                  packed["emb_ln_g"], packed["emb_ln_b"],
                                  packed["stacked"], packed["num_heads"])      # (B, T, H)


# ----------------------------- pure-JAX reference -------------------------------

def reference_forward(tokens, params):
    pad = params["pad"]
    nonpad = (tokens != pad)
    positions = jnp.cumsum(nonpad.astype(jnp.int32), axis=1) * nonpad.astype(jnp.int32) + pad
    x = params["tok_emb"][tokens] + params["pos_emb"][positions]

    def ln(x, g, b):
        mu = jnp.mean(x, axis=-1, keepdims=True)
        var = jnp.mean((x - mu) ** 2, axis=-1, keepdims=True)
        return (x - mu) * jax.lax.rsqrt(var + LN_EPS) * g + b

    x = ln(x, params["emb_ln_g"], params["emb_ln_b"])
    x = x * nonpad.astype(jnp.float32)[:, :, None]

    B, T, H = x.shape
    nh = params["num_heads"]
    hd = H // nh
    amask = jnp.where(nonpad, 0.0, NEG_INF)[:, None, None, :]      # (B,1,1,T)
    for lp in params["layers"]:
        q = (x @ lp["wq"] + lp["bq"]) * (hd ** -0.5)
        k = x @ lp["wk"] + lp["bk"]
        v = x @ lp["wv"] + lp["bv"]
        q = q.reshape(B, T, nh, hd).transpose(0, 2, 1, 3)
        k = k.reshape(B, T, nh, hd).transpose(0, 2, 1, 3)
        v = v.reshape(B, T, nh, hd).transpose(0, 2, 1, 3)
        s = jnp.einsum("bhqd,bhkd->bhqk", q, k) + amask
        p = jax.nn.softmax(s, axis=-1)
        a = jnp.einsum("bhqk,bhkd->bhqd", p, v).transpose(0, 2, 1, 3).reshape(B, T, H)
        a = a @ lp["wo"] + lp["bo"]
        x = ln(x + a, lp["ln1_g"], lp["ln1_b"])
        h1 = x @ lp["w1"] + lp["b1"]
        h1 = 0.5 * h1 * (1.0 + jax.lax.erf(h1 * (1.0 / math.sqrt(2.0))))
        x = ln(x + h1 @ lp["w2"] + lp["b2"], lp["ln2_g"], lp["ln2_b"])
    return x


# ----------------------------- main ---------------------------------------------

if __name__ == "__main__":
    # small SEED-Encoder / RoBERTa config
    VOCAB, PAD = 100, 1
    LAYERS, H, FFN, HEADS = 2, 32, 64, 4
    MAX_POS = 16
    B, T = 2, 8

    key = jax.random.PRNGKey(0)
    k_par, k_tok = jax.random.split(key)
    params = init_params(k_par, vocab_size=VOCAB, pad_id=PAD, num_layers=LAYERS,
                         embed_dim=H, ffn_dim=FFN, num_heads=HEADS,
                         max_positions=MAX_POS)

    tokens = jax.random.randint(k_tok, (B, T), 2, VOCAB, dtype=jnp.int32)
    tokens = tokens.at[1, -2:].set(PAD)   # exercise key-padding masking

    packed = pack_params(params)
    out = roberta_encoder_forward(tokens, packed)
    out = jax.block_until_ready(out)

    ref = reference_forward(tokens, params)        # pure f32 reference
    assert out.shape == (B, T, H)
    max_err = float(jnp.max(jnp.abs(out - ref)))
    assert jnp.allclose(out, ref, atol=5e-2, rtol=5e-2), max_err

    print("KERNEL_OK")
</pallas_src>

<mosaic_0001>
module attributes {stable_mosaic.version = 11 : i64} {
  func.func @encoder_stack_kernel(%arg0: i32, %arg1: i32, %arg2: memref<1x8x32xf32, #tpu.memory_space<vmem>>, %arg3: memref<1x8x1xf32, #tpu.memory_space<vmem>>, %arg4: memref<1x1x8xf32, #tpu.memory_space<vmem>>, %arg5: memref<1x32xf32, #tpu.memory_space<vmem>>, %arg6: memref<1x32xf32, #tpu.memory_space<vmem>>, %arg7: memref<1x32x96xbf16, #tpu.memory_space<vmem>>, %arg8: memref<1x1x96xf32, #tpu.memory_space<vmem>>, %arg9: memref<1x32x32xbf16, #tpu.memory_space<vmem>>, %arg10: memref<1x1x32xf32, #tpu.memory_space<vmem>>, %arg11: memref<1x1x32xf32, #tpu.memory_space<vmem>>, %arg12: memref<1x1x32xf32, #tpu.memory_space<vmem>>, %arg13: memref<1x32x64xbf16, #tpu.memory_space<vmem>>, %arg14: memref<1x1x64xf32, #tpu.memory_space<vmem>>, %arg15: memref<1x64x32xbf16, #tpu.memory_space<vmem>>, %arg16: memref<1x1x32xf32, #tpu.memory_space<vmem>>, %arg17: memref<1x1x32xf32, #tpu.memory_space<vmem>>, %arg18: memref<1x1x32xf32, #tpu.memory_space<vmem>>, %arg19: memref<1x8x32xf32, #tpu.memory_space<vmem>>, %arg20: memref<8x32xbf16, #tpu.memory_space<vmem>>) attributes {dimension_semantics = [#tpu.dimension_semantics<parallel>, #tpu.dimension_semantics<arbitrary>], iteration_bounds = array<i64: 2, 2>, scalar_prefetch = 0 : i64, scratch_operands = 1 : i64, tpu.core_type = #tpu.core_type<tc>, window_params = [{transform_indices = @transform_0, window_bounds = array<i64: 1, 8, 32>}, {transform_indices = @transform_1, window_bounds = array<i64: 1, 8, 1>}, {transform_indices = @transform_2, window_bounds = array<i64: 1, 1, 8>}, {pipeline_mode = #tpu.pipeline_mode<synchronous>, transform_indices = @transform_3, window_bounds = array<i64: 1, 32>}, {pipeline_mode = #tpu.pipeline_mode<synchronous>, transform_indices = @transform_4, window_bounds = array<i64: 1, 32>}, {transform_indices = @transform_5, window_bounds = array<i64: 1, 32, 96>}, {transform_indices = @transform_6, window_bounds = array<i64: 1, 1, 96>}, {transform_indices = @transform_7, window_bounds = array<i64: 1, 32, 32>}, {transform_indices = @transform_8, window_bounds = array<i64: 1, 1, 32>}, {transform_indices = @transform_9, window_bounds = array<i64: 1, 1, 32>}, {transform_indices = @transform_10, window_bounds = array<i64: 1, 1, 32>}, {transform_indices = @transform_11, window_bounds = array<i64: 1, 32, 64>}, {transform_indices = @transform_12, window_bounds = array<i64: 1, 1, 64>}, {transform_indices = @transform_13, window_bounds = array<i64: 1, 64, 32>}, {transform_indices = @transform_14, window_bounds = array<i64: 1, 1, 32>}, {transform_indices = @transform_15, window_bounds = array<i64: 1, 1, 32>}, {transform_indices = @transform_16, window_bounds = array<i64: 1, 1, 32>}, {transform_indices = @transform_17, window_bounds = array<i64: 1, 8, 32>}]} {
    %c0_i32 = arith.constant 0 : i32
    %0 = arith.cmpi eq, %arg1, %c0_i32 : i32
    %1 = arith.extui %0 : i1 to i32
    %c0_i32_0 = arith.constant 0 : i32
    %2 = arith.cmpi ne, %1, %c0_i32_0 : i32
    scf.if %2 {
      %c0_84 = arith.constant 0 : index
      %c0_85 = arith.constant 0 : index
      %c0_86 = arith.constant 0 : index
      %190 = vector.load %arg2[%c0_84, %c0_85, %c0_86] : memref<1x8x32xf32, #tpu.memory_space<vmem>>, vector<1x8x32xf32>
      %191 = vector.shape_cast %190 : vector<1x8x32xf32> to vector<8x32xf32>
      %c0_87 = arith.constant 0 : index
      %c0_88 = arith.constant 0 : index
      %192 = vector.load %arg5[%c0_87, %c0_88] : memref<1x32xf32, #tpu.memory_space<vmem>>, vector<1x32xf32>
      %c0_89 = arith.constant 0 : index
      %c0_90 = arith.constant 0 : index
      %193 = vector.load %arg6[%c0_89, %c0_90] : memref<1x32xf32, #tpu.memory_space<vmem>>, vector<1x32xf32>
      %cst_91 = arith.constant dense<0.000000e+00> : vector<8xf32>
      %194 = vector.multi_reduction <add>, %191, %cst_91 [1] : vector<8x32xf32> to vector<8xf32>
      %195 = vector.shape_cast %194 : vector<8xf32> to vector<8x1xf32>
      %cst_92 = arith.constant 3.200000e+01 : f32
      %196 = vector.broadcast %cst_92 : f32 to vector<8x1xf32>
      %197 = arith.divf %195, %196 : vector<8x1xf32>
      %198 = vector.broadcast %197 : vector<8x1xf32> to vector<8x32xf32>
      %199 = arith.subf %191, %198 : vector<8x32xf32>
      %200 = arith.mulf %199, %199 : vector<8x32xf32>
      %cst_93 = arith.constant dense<0.000000e+00> : vector<8xf32>
      %201 = vector.multi_reduction <add>, %200, %cst_93 [1] : vector<8x32xf32> to vector<8xf32>
      %202 = vector.shape_cast %201 : vector<8xf32> to vector<8x1xf32>
      %cst_94 = arith.constant 3.200000e+01 : f32
      %203 = vector.broadcast %cst_94 : f32 to vector<8x1xf32>
      %204 = arith.divf %202, %203 : vector<8x1xf32>
      %205 = vector.broadcast %197 : vector<8x1xf32> to vector<8x32xf32>
      %206 = arith.subf %191, %205 : vector<8x32xf32>
      %cst_95 = arith.constant 9.99999974E-6 : f32
      %207 = vector.broadcast %cst_95 : f32 to vector<8x1xf32>
      %208 = arith.addf %204, %207 : vector<8x1xf32>
      %209 = math.rsqrt %208 : vector<8x1xf32>
      %210 = vector.broadcast %209 : vector<8x1xf32> to vector<8x32xf32>
      %211 = arith.mulf %206, %210 : vector<8x32xf32>
      %212 = vector.broadcast %192 : vector<1x32xf32> to vector<8x32xf32>
      %213 = arith.mulf %211, %212 : vector<8x32xf32>
      %214 = vector.broadcast %193 : vector<1x32xf32> to vector<8x32xf32>
      %215 = arith.addf %213, %214 : vector<8x32xf32>
      %c0_96 = arith.constant 0 : index
      %c0_97 = arith.constant 0 : index
      %c0_98 = arith.constant 0 : index
      %216 = vector.load %arg3[%c0_96, %c0_97, %c0_98] : memref<1x8x1xf32, #tpu.memory_space<vmem>>, vector<1x8x1xf32>
      %217 = vector.shape_cast %216 : vector<1x8x1xf32> to vector<8x1xf32>
      %218 = vector.broadcast %217 : vector<8x1xf32> to vector<8x32xf32>
      %219 = arith.mulf %215, %218 : vector<8x32xf32>
      %c0_99 = arith.constant 0 : index
      %c0_100 = arith.constant 0 : index
      %c0_101 = arith.constant 0 : index
      %220 = vector.load %arg19[%c0_99, %c0_100, %c0_101] : memref<1x8x32xf32, #tpu.memory_space<vmem>>, vector<1x8x32xf32>
      %221 = vector.shape_cast %220 : vector<1x8x32xf32> to vector<8x32xf32>
      %222 = vector.shape_cast %219 : vector<8x32xf32> to vector<1x8x32xf32>
      tpu.vector_store %arg19[%c0_99, %c0_100, %c0_101], %222 {strides = array<i32>} : memref<1x8x32xf32, #tpu.memory_space<vmem>>, vector<1x8x32xf32>,
    } else {
    }
    %c0 = arith.constant 0 : index
    %c0_1 = arith.constant 0 : index
    %c0_2 = arith.constant 0 : index
    %3 = vector.load %arg19[%c0, %c0_1, %c0_2] : memref<1x8x32xf32, #tpu.memory_space<vmem>>, vector<1x8x32xf32>
    %4 = vector.shape_cast %3 : vector<1x8x32xf32> to vector<8x32xf32>
    %c0_3 = arith.constant 0 : index
    %c0_4 = arith.constant 0 : index
    %c0_5 = arith.constant 0 : index
    %5 = vector.load %arg4[%c0_3, %c0_4, %c0_5] : memref<1x1x8xf32, #tpu.memory_space<vmem>>, vector<1x1x8xf32>
    %6 = vector.shape_cast %5 : vector<1x1x8xf32> to vector<1x8xf32>
    %7 = arith.truncf %4 : vector<8x32xf32> to vector<8x32xbf16>
    %c0_6 = arith.constant 0 : index
    %c0_7 = arith.constant 0 : index
    %c0_8 = arith.constant 0 : index
    %8 = vector.load %arg7[%c0_6, %c0_7, %c0_8] : memref<1x32x96xbf16, #tpu.memory_space<vmem>>, vector<1x32x96xbf16>
    %9 = vector.shape_cast %8 : vector<1x32x96xbf16> to vector<32x96xbf16>
    %cst = arith.constant dense<0.000000e+00> : vector<8x96xf32>
    %10 = tpu.matmul %7, %9, %cst {dimension_numbers = #tpu.dot_dimension_numbers<[1], [0], [0], [1], [0, 0, 1, 1], [], []>} : vector<8x32xbf16>, vector<32x96xbf16>, vector<8x96xf32> -> vector<8x96xf32>
    %c0_9 = arith.constant 0 : index
    %c0_10 = arith.constant 0 : index
    %c0_11 = arith.constant 0 : index
    %11 = vector.load %arg8[%c0_9, %c0_10, %c0_11] : memref<1x1x96xf32, #tpu.memory_space<vmem>>, vector<1x1x96xf32>
    %12 = vector.shape_cast %11 : vector<1x1x96xf32> to vector<1x96xf32>
    %13 = vector.broadcast %12 : vector<1x96xf32> to vector<8x96xf32>
    %14 = arith.addf %10, %13 : vector<8x96xf32>
    %15 = vector.extract_strided_slice %14 {offsets = [0, 0], sizes = [8, 32], strides = [1, 1]} : vector<8x96xf32> to vector<8x32xf32>
    %16 = arith.truncf %15 : vector<8x32xf32> to vector<8x32xbf16>
    %17 = vector.extract_strided_slice %14 {offsets = [0, 32], sizes = [8, 32], strides = [1, 1]} : vector<8x96xf32> to vector<8x32xf32>
    %18 = arith.truncf %17 : vector<8x32xf32> to vector<8x32xbf16>
    %19 = vector.extract_strided_slice %14 {offsets = [0, 64], sizes = [8, 32], strides = [1, 1]} : vector<8x96xf32> to vector<8x32xf32>
    %20 = arith.truncf %19 : vector<8x32xf32> to vector<8x32xbf16>
    %21 = vector.extract_strided_slice %16 {offsets = [0, 0], sizes = [8, 8], strides = [1, 1]} : vector<8x32xbf16> to vector<8x8xbf16>
    %22 = vector.extract_strided_slice %18 {offsets = [0, 0], sizes = [8, 8], strides = [1, 1]} : vector<8x32xbf16> to vector<8x8xbf16>
    %cst_12 = arith.constant dense<0.000000e+00> : vector<8x8xf32>
    %23 = tpu.matmul %21, %22, %cst_12 {dimension_numbers = #tpu.dot_dimension_numbers<[1], [1], [0], [0], [0, 0, 1, 0], [], []>} : vector<8x8xbf16>, vector<8x8xbf16>, vector<8x8xf32> -> vector<8x8xf32>
    %24 = vector.broadcast %6 : vector<1x8xf32> to vector<8x8xf32>
    %25 = arith.addf %23, %24 : vector<8x8xf32>
    %cst_13 = arith.constant dense<0xFF800000> : vector<8xf32>
    %26 = vector.multi_reduction <maximumf>, %25, %cst_13 [1] : vector<8x8xf32> to vector<8xf32>
    %27 = vector.shape_cast %26 : vector<8xf32> to vector<8x1xf32>
    %28 = vector.broadcast %27 : vector<8x1xf32> to vector<8x8xf32>
    %29 = arith.subf %25, %28 : vector<8x8xf32>
    %30 = math.exp %29 : vector<8x8xf32>
    %cst_14 = arith.constant dense<0.000000e+00> : vector<8xf32>
    %31 = vector.multi_reduction <add>, %30, %cst_14 [1] : vector<8x8xf32> to vector<8xf32>
    %32 = vector.shape_cast %31 : vector<8xf32> to vector<8x1xf32>
    %33 = tpu.reciprocal %32 {approx = true} : vector<8x1xf32> -> vector<8x1xf32>
    %34 = vector.broadcast %33 : vector<8x1xf32> to vector<8x8xf32>
    %35 = arith.mulf %30, %34 : vector<8x8xf32>
    %36 = arith.truncf %35 : vector<8x8xf32> to vector<8x8xbf16>
    %37 = vector.extract_strided_slice %20 {offsets = [0, 0], sizes = [8, 8], strides = [1, 1]} : vector<8x32xbf16> to vector<8x8xbf16>
    %cst_15 = arith.constant dense<0.000000e+00> : vector<8x8xf32>
    %38 = tpu.matmul %36, %37, %cst_15 {dimension_numbers = #tpu.dot_dimension_numbers<[1], [0], [0], [1], [0, 0, 1, 1], [], []>} : vector<8x8xbf16>, vector<8x8xbf16>, vector<8x8xf32> -> vector<8x8xf32>
    %39 = arith.truncf %38 : vector<8x8xf32> to vector<8x8xbf16>
    %c0_16 = arith.constant 0 : index
    %c0_17 = arith.constant 0 : index
    %40 = vector.load %arg20[%c0_16, %c0_17] : memref<8x32xbf16, #tpu.memory_space<vmem>>, vector<8x8xbf16>
    tpu.vector_store %arg20[%c0_16, %c0_17], %39 {strides = array<i32>} : memref<8x32xbf16, #tpu.memory_space<vmem>>, vector<8x8xbf16>,
    %41 = vector.extract_strided_slice %16 {offsets = [0, 8], sizes = [8, 8], strides = [1, 1]} : vector<8x32xbf16> to vector<8x8xbf16>
    %42 = vector.extract_strided_slice %18 {offsets = [0, 8], sizes = [8, 8], strides = [1, 1]} : vector<8x32xbf16> to vector<8x8xbf16>
    %cst_18 = arith.constant dense<0.000000e+00> : vector<8x8xf32>
    %43 = tpu.matmul %41, %42, %cst_18 {dimension_numbers = #tpu.dot_dimension_numbers<[1], [1], [0], [0], [0, 0, 1, 0], [], []>} : vector<8x8xbf16>, vector<8x8xbf16>, vector<8x8xf32> -> vector<8x8xf32>
    %44 = vector.broadcast %6 : vector<1x8xf32> to vector<8x8xf32>
    %45 = arith.addf %43, %44 : vector<8x8xf32>
    %cst_19 = arith.constant dense<0xFF800000> : vector<8xf32>
    %46 = vector.multi_reduction <maximumf>, %45, %cst_19 [1] : vector<8x8xf32> to vector<8xf32>
    %47 = vector.shape_cast %46 : vector<8xf32> to vector<8x1xf32>
    %48 = vector.broadcast %47 : vector<8x1xf32> to vector<8x8xf32>
    %49 = arith.subf %45, %48 : vector<8x8xf32>
    %50 = math.exp %49 : vector<8x8xf32>
    %cst_20 = arith.constant dense<0.000000e+00> : vector<8xf32>
    %51 = vector.multi_reduction <add>, %50, %cst_20 [1] : vector<8x8xf32> to vector<8xf32>
    %52 = vector.shape_cast %51 : vector<8xf32> to vector<8x1xf32>
    %53 = tpu.reciprocal %52 {approx = true} : vector<8x1xf32> -> vector<8x1xf32>
    %54 = vector.broadcast %53 : vector<8x1xf32> to vector<8x8xf32>
    %55 = arith.mulf %50, %54 : vector<8x8xf32>
    %56 = arith.truncf %55 : vector<8x8xf32> to vector<8x8xbf16>
    %57 = vector.extract_strided_slice %20 {offsets = [0, 8], sizes = [8, 8], strides = [1, 1]} : vector<8x32xbf16> to vector<8x8xbf16>
    %cst_21 = arith.constant dense<0.000000e+00> : vector<8x8xf32>
    %58 = tpu.matmul %56, %57, %cst_21 {dimension_numbers = #tpu.dot_dimension_numbers<[1], [0], [0], [1], [0, 0, 1, 1], [], []>} : vector<8x8xbf16>, vector<8x8xbf16>, vector<8x8xf32> -> vector<8x8xf32>
    %59 = arith.truncf %58 : vector<8x8xf32> to vector<8x8xbf16>
    %c0_22 = arith.constant 0 : index
    %c8 = arith.constant 8 : index
    %60 = vector.load %arg20[%c0_22, %c8] : memref<8x32xbf16, #tpu.memory_space<vmem>>, vector<8x8xbf16>
    tpu.vector_store %arg20[%c0_22, %c8], %59 {strides = array<i32>} : memref<8x32xbf16, #tpu.memory_space<vmem>>, vector<8x8xbf16>,
    %61 = vector.extract_strided_slice %16 {offsets = [0, 16], sizes = [8, 8], strides = [1, 1]} : vector<8x32xbf16> to vector<8x8xbf16>
    %62 = vector.extract_strided_slice %18 {offsets = [0, 16], sizes = [8, 8], strides = [1, 1]} : vector<8x32xbf16> to vector<8x8xbf16>
    %cst_23 = arith.constant dense<0.000000e+00> : vector<8x8xf32>
    %63 = tpu.matmul %61, %62, %cst_23 {dimension_numbers = #tpu.dot_dimension_numbers<[1], [1], [0], [0], [0, 0, 1, 0], [], []>} : vector<8x8xbf16>, vector<8x8xbf16>, vector<8x8xf32> -> vector<8x8xf32>
    %64 = vector.broadcast %6 : vector<1x8xf32> to vector<8x8xf32>
    %65 = arith.addf %63, %64 : vector<8x8xf32>
    %cst_24 = arith.constant dense<0xFF800000> : vector<8xf32>
    %66 = vector.multi_reduction <maximumf>, %65, %cst_24 [1] : vector<8x8xf32> to vector<8xf32>
    %67 = vector.shape_cast %66 : vector<8xf32> to vector<8x1xf32>
    %68 = vector.broadcast %67 : vector<8x1xf32> to vector<8x8xf32>
    %69 = arith.subf %65, %68 : vector<8x8xf32>
    %70 = math.exp %69 : vector<8x8xf32>
    %cst_25 = arith.constant dense<0.000000e+00> : vector<8xf32>
    %71 = vector.multi_reduction <add>, %70, %cst_25 [1] : vector<8x8xf32> to vector<8xf32>
    %72 = vector.shape_cast %71 : vector<8xf32> to vector<8x1xf32>
    %73 = tpu.reciprocal %72 {approx = true} : vector<8x1xf32> -> vector<8x1xf32>
    %74 = vector.broadcast %73 : vector<8x1xf32> to vector<8x8xf32>
    %75 = arith.mulf %70, %74 : vector<8x8xf32>
    %76 = arith.truncf %75 : vector<8x8xf32> to vector<8x8xbf16>
    %77 = vector.extract_strided_slice %20 {offsets = [0, 16], sizes = [8, 8], strides = [1, 1]} : vector<8x32xbf16> to vector<8x8xbf16>
    %cst_26 = arith.constant dense<0.000000e+00> : vector<8x8xf32>
    %78 = tpu.matmul %76, %77, %cst_26 {dimension_numbers = #tpu.dot_dimension_numbers<[1], [0], [0], [1], [0, 0, 1, 1], [], []>} : vector<8x8xbf16>, vector<8x8xbf16>, vector<8x8xf32> -> vector<8x8xf32>
    %79 = arith.truncf %78 : vector<8x8xf32> to vector<8x8xbf16>
    %c0_27 = arith.constant 0 : index
    %c16 = arith.constant 16 : index
    %80 = vector.load %arg20[%c0_27, %c16] : memref<8x32xbf16, #tpu.memory_space<vmem>>, vector<8x8xbf16>
    tpu.vector_store %arg20[%c0_27, %c16], %79 {strides = array<i32>} : memref<8x32xbf16, #tpu.memory_space<vmem>>, vector<8x8xbf16>,
    %81 = vector.extract_strided_slice %16 {offsets = [0, 24], sizes = [8, 8], strides = [1, 1]} : vector<8x32xbf16> to vector<8x8xbf16>
    %82 = vector.extract_strided_slice %18 {offsets = [0, 24], sizes = [8, 8], strides = [1, 1]} : vector<8x32xbf16> to vector<8x8xbf16>
    %cst_28 = arith.constant dense<0.000000e+00> : vector<8x8xf32>
    %83 = tpu.matmul %81, %82, %cst_28 {dimension_numbers = #tpu.dot_dimension_numbers<[1], [1], [0], [0], [0, 0, 1, 0], [], []>} : vector<8x8xbf16>, vector<8x8xbf16>, vector<8x8xf32> -> vector<8x8xf32>
    %84 = vector.broadcast %6 : vector<1x8xf32> to vector<8x8xf32>
    %85 = arith.addf %83, %84 : vector<8x8xf32>
    %cst_29 = arith.constant dense<0xFF800000> : vector<8xf32>
    %86 = vector.multi_reduction <maximumf>, %85, %cst_29 [1] : vector<8x8xf32> to vector<8xf32>
    %87 = vector.shape_cast %86 : vector<8xf32> to vector<8x1xf32>
    %88 = vector.broadcast %87 : vector<8x1xf32> to vector<8x8xf32>
    %89 = arith.subf %85, %88 : vector<8x8xf32>
    %90 = math.exp %89 : vector<8x8xf32>
    %cst_30 = arith.constant dense<0.000000e+00> : vector<8xf32>
    %91 = vector.multi_reduction <add>, %90, %cst_30 [1] : vector<8x8xf32> to vector<8xf32>
    %92 = vector.shape_cast %91 : vector<8xf32> to vector<8x1xf32>
    %93 = tpu.reciprocal %92 {approx = true} : vector<8x1xf32> -> vector<8x1xf32>
    %94 = vector.broadcast %93 : vector<8x1xf32> to vector<8x8xf32>
    %95 = arith.mulf %90, %94 : vector<8x8xf32>
    %96 = arith.truncf %95 : vector<8x8xf32> to vector<8x8xbf16>
    %97 = vector.extract_strided_slice %20 {offsets = [0, 24], sizes = [8, 8], strides = [1, 1]} : vector<8x32xbf16> to vector<8x8xbf16>
    %cst_31 = arith.constant dense<0.000000e+00> : vector<8x8xf32>
    %98 = tpu.matmul %96, %97, %cst_31 {dimension_numbers = #tpu.dot_dimension_numbers<[1], [0], [0], [1], [0, 0, 1, 1], [], []>} : vector<8x8xbf16>, vector<8x8xbf16>, vector<8x8xf32> -> vector<8x8xf32>
    %99 = arith.truncf %98 : vector<8x8xf32> to vector<8x8xbf16>
    %c0_32 = arith.constant 0 : index
    %c24 = arith.constant 24 : index
    %100 = vector.load %arg20[%c0_32, %c24] : memref<8x32xbf16, #tpu.memory_space<vmem>>, vector<8x8xbf16>
    tpu.vector_store %arg20[%c0_32, %c24], %99 {strides = array<i32>} : memref<8x32xbf16, #tpu.memory_space<vmem>>, vector<8x8xbf16>,
    %c0_33 = arith.constant 0 : index
    %c0_34 = arith.constant 0 : index
    %101 = vector.load %arg20[%c0_33, %c0_34] : memref<8x32xbf16, #tpu.memory_space<vmem>>, vector<8x32xbf16>
    %c0_35 = arith.constant 0 : index
    %c0_36 = arith.constant 0 : index
    %c0_37 = arith.constant 0 : index
    %102 = vector.load %arg9[%c0_35, %c0_36, %c0_37] : memref<1x32x32xbf16, #tpu.memory_space<vmem>>, vector<1x32x32xbf16>
    %103 = vector.shape_cast %102 : vector<1x32x32xbf16> to vector<32x32xbf16>
    %cst_38 = arith.constant dense<0.000000e+00> : vector<8x32xf32>
    %104 = tpu.matmul %101, %103, %cst_38 {dimension_numbers = #tpu.dot_dimension_numbers<[1], [0], [0], [1], [0, 0, 1, 1], [], []>} : vector<8x32xbf16>, vector<32x32xbf16>, vector<8x32xf32> -> vector<8x32xf32>
    %c0_39 = arith.constant 0 : index
    %c0_40 = arith.constant 0 : index
    %c0_41 = arith.constant 0 : index
    %105 = vector.load %arg10[%c0_39, %c0_40, %c0_41] : memref<1x1x32xf32, #tpu.memory_space<vmem>>, vector<1x1x32xf32>
    %106 = vector.shape_cast %105 : vector<1x1x32xf32> to vector<1x32xf32>
    %107 = vector.broadcast %106 : vector<1x32xf32> to vector<8x32xf32>
    %108 = arith.addf %104, %107 : vector<8x32xf32>
    %109 = arith.addf %4, %108 : vector<8x32xf32>
    %c0_42 = arith.constant 0 : index
    %c0_43 = arith.constant 0 : index
    %c0_44 = arith.constant 0 : index
    %110 = vector.load %arg11[%c0_42, %c0_43, %c0_44] : memref<1x1x32xf32, #tpu.memory_space<vmem>>, vector<1x1x32xf32>
    %111 = vector.shape_cast %110 : vector<1x1x32xf32> to vector<1x32xf32>
    %c0_45 = arith.constant 0 : index
    %c0_46 = arith.constant 0 : index
    %c0_47 = arith.constant 0 : index
    %112 = vector.load %arg12[%c0_45, %c0_46, %c0_47] : memref<1x1x32xf32, #tpu.memory_space<vmem>>, vector<1x1x32xf32>
    %113 = vector.shape_cast %112 : vector<1x1x32xf32> to vector<1x32xf32>
    %cst_48 = arith.constant dense<0.000000e+00> : vector<8xf32>
    %114 = vector.multi_reduction <add>, %109, %cst_48 [1] : vector<8x32xf32> to vector<8xf32>
    %115 = vector.shape_cast %114 : vector<8xf32> to vector<8x1xf32>
    %cst_49 = arith.constant 3.200000e+01 : f32
    %116 = vector.broadcast %cst_49 : f32 to vector<8x1xf32>
    %117 = arith.divf %115, %116 : vector<8x1xf32>
    %118 = vector.broadcast %117 : vector<8x1xf32> to vector<8x32xf32>
    %119 = arith.subf %109, %118 : vector<8x32xf32>
    %120 = arith.mulf %119, %119 : vector<8x32xf32>
    %cst_50 = arith.constant dense<0.000000e+00> : vector<8xf32>
    %121 = vector.multi_reduction <add>, %120, %cst_50 [1] : vector<8x32xf32> to vector<8xf32>
    %122 = vector.shape_cast %121 : vector<8xf32> to vector<8x1xf32>
    %cst_51 = arith.constant 3.200000e+01 : f32
    %123 = vector.broadcast %cst_51 : f32 to vector<8x1xf32>
    %124 = arith.divf %122, %123 : vector<8x1xf32>
    %125 = vector.broadcast %117 : vector<8x1xf32> to vector<8x32xf32>
    %126 = arith.subf %109, %125 : vector<8x32xf32>
    %cst_52 = arith.constant 9.99999974E-6 : f32
    %127 = vector.broadcast %cst_52 : f32 to vector<8x1xf32>
    %128 = arith.addf %124, %127 : vector<8x1xf32>
    %129 = math.rsqrt %128 : vector<8x1xf32>
    %130 = vector.broadcast %129 : vector<8x1xf32> to vector<8x32xf32>
    %131 = arith.mulf %126, %130 : vector<8x32xf32>
    %132 = vector.broadcast %111 : vector<1x32xf32> to vector<8x32xf32>
    %133 = arith.mulf %131, %132 : vector<8x32xf32>
    %134 = vector.broadcast %113 : vector<1x32xf32> to vector<8x32xf32>
    %135 = arith.addf %133, %134 : vector<8x32xf32>
    %136 = arith.truncf %135 : vector<8x32xf32> to vector<8x32xbf16>
    %c0_53 = arith.constant 0 : index
    %c0_54 = arith.constant 0 : index
    %c0_55 = arith.constant 0 : index
    %137 = vector.load %arg13[%c0_53, %c0_54, %c0_55] : memref<1x32x64xbf16, #tpu.memory_space<vmem>>, vector<1x32x64xbf16>
    %138 = vector.shape_cast %137 : vector<1x32x64xbf16> to vector<32x64xbf16>
    %cst_56 = arith.constant dense<0.000000e+00> : vector<8x64xf32>
    %139 = tpu.matmul %136, %138, %cst_56 {dimension_numbers = #tpu.dot_dimension_numbers<[1], [0], [0], [1], [0, 0, 1, 1], [], []>} : vector<8x32xbf16>, vector<32x64xbf16>, vector<8x64xf32> -> vector<8x64xf32>
    %c0_57 = arith.constant 0 : index
    %c0_58 = arith.constant 0 : index
    %c0_59 = arith.constant 0 : index
    %140 = vector.load %arg14[%c0_57, %c0_58, %c0_59] : memref<1x1x64xf32, #tpu.memory_space<vmem>>, vector<1x1x64xf32>
    %141 = vector.shape_cast %140 : vector<1x1x64xf32> to vector<1x64xf32>
    %142 = vector.broadcast %141 : vector<1x64xf32> to vector<8x64xf32>
    %143 = arith.addf %139, %142 : vector<8x64xf32>
    %cst_60 = arith.constant 5.000000e-01 : f32
    %144 = vector.broadcast %cst_60 : f32 to vector<8x64xf32>
    %145 = arith.mulf %144, %143 : vector<8x64xf32>
    %cst_61 = arith.constant 0.707106769 : f32
    %146 = vector.broadcast %cst_61 : f32 to vector<8x64xf32>
    %147 = arith.mulf %143, %146 : vector<8x64xf32>
    %148 = math.erf %147 : vector<8x64xf32>
    %cst_62 = arith.constant 1.000000e+00 : f32
    %149 = vector.broadcast %cst_62 : f32 to vector<8x64xf32>
    %150 = arith.addf %149, %148 : vector<8x64xf32>
    %151 = arith.mulf %145, %150 : vector<8x64xf32>
    %152 = arith.truncf %151 : vector<8x64xf32> to vector<8x64xbf16>
    %c0_63 = arith.constant 0 : index
    %c0_64 = arith.constant 0 : index
    %c0_65 = arith.constant 0 : index
    %153 = vector.load %arg15[%c0_63, %c0_64, %c0_65] : memref<1x64x32xbf16, #tpu.memory_space<vmem>>, vector<1x64x32xbf16>
    %154 = vector.shape_cast %153 : vector<1x64x32xbf16> to vector<64x32xbf16>
    %cst_66 = arith.constant dense<0.000000e+00> : vector<8x32xf32>
    %155 = tpu.matmul %152, %154, %cst_66 {dimension_numbers = #tpu.dot_dimension_numbers<[1], [0], [0], [1], [0, 0, 1, 1], [], []>} : vector<8x64xbf16>, vector<64x32xbf16>, vector<8x32xf32> -> vector<8x32xf32>
    %c0_67 = arith.constant 0 : index
    %c0_68 = arith.constant 0 : index
    %c0_69 = arith.constant 0 : index
    %156 = vector.load %arg16[%c0_67, %c0_68, %c0_69] : memref<1x1x32xf32, #tpu.memory_space<vmem>>, vector<1x1x32xf32>
    %157 = vector.shape_cast %156 : vector<1x1x32xf32> to vector<1x32xf32>
    %158 = vector.broadcast %157 : vector<1x32xf32> to vector<8x32xf32>
    %159 = arith.addf %155, %158 : vector<8x32xf32>
    %160 = arith.addf %135, %159 : vector<8x32xf32>
    %c0_70 = arith.constant 0 : index
    %c0_71 = arith.constant 0 : index
    %c0_72 = arith.constant 0 : index
    %161 = vector.load %arg17[%c0_70, %c0_71, %c0_72] : memref<1x1x32xf32, #tpu.memory_space<vmem>>, vector<1x1x32xf32>
    %162 = vector.shape_cast %161 : vector<1x1x32xf32> to vector<1x32xf32>
    %c0_73 = arith.constant 0 : index
    %c0_74 = arith.constant 0 : index
    %c0_75 = arith.constant 0 : index
    %163 = vector.load %arg18[%c0_73, %c0_74, %c0_75] : memref<1x1x32xf32, #tpu.memory_space<vmem>>, vector<1x1x32xf32>
    %164 = vector.shape_cast %163 : vector<1x1x32xf32> to vector<1x32xf32>
    %cst_76 = arith.constant dense<0.000000e+00> : vector<8xf32>
    %165 = vector.multi_reduction <add>, %160, %cst_76 [1] : vector<8x32xf32> to vector<8xf32>
    %166 = vector.shape_cast %165 : vector<8xf32> to vector<8x1xf32>
    %cst_77 = arith.constant 3.200000e+01 : f32
    %167 = vector.broadcast %cst_77 : f32 to vector<8x1xf32>
    %168 = arith.divf %166, %167 : vector<8x1xf32>
    %169 = vector.broadcast %168 : vector<8x1xf32> to vector<8x32xf32>
    %170 = arith.subf %160, %169 : vector<8x32xf32>
    %171 = arith.mulf %170, %170 : vector<8x32xf32>
    %cst_78 = arith.constant dense<0.000000e+00> : vector<8xf32>
    %172 = vector.multi_reduction <add>, %171, %cst_78 [1] : vector<8x32xf32> to vector<8xf32>
    %173 = vector.shape_cast %172 : vector<8xf32> to vector<8x1xf32>
    %cst_79 = arith.constant 3.200000e+01 : f32
    %174 = vector.broadcast %cst_79 : f32 to vector<8x1xf32>
    %175 = arith.divf %173, %174 : vector<8x1xf32>
    %176 = vector.broadcast %168 : vector<8x1xf32> to vector<8x32xf32>
    %177 = arith.subf %160, %176 : vector<8x32xf32>
    %cst_80 = arith.constant 9.99999974E-6 : f32
    %178 = vector.broadcast %cst_80 : f32 to vector<8x1xf32>
    %179 = arith.addf %175, %178 : vector<8x1xf32>
    %180 = math.rsqrt %179 : vector<8x1xf32>
    %181 = vector.broadcast %180 : vector<8x1xf32> to vector<8x32xf32>
    %182 = arith.mulf %177, %181 : vector<8x32xf32>
    %183 = vector.broadcast %162 : vector<1x32xf32> to vector<8x32xf32>
    %184 = arith.mulf %182, %183 : vector<8x32xf32>
    %185 = vector.broadcast %164 : vector<1x32xf32> to vector<8x32xf32>
    %186 = arith.addf %184, %185 : vector<8x32xf32>
    %c0_81 = arith.constant 0 : index
    %c0_82 = arith.constant 0 : index
    %c0_83 = arith.constant 0 : index
    %187 = vector.load %arg19[%c0_81, %c0_82, %c0_83] : memref<1x8x32xf32, #tpu.memory_space<vmem>>, vector<1x8x32xf32>
    %188 = vector.shape_cast %187 : vector<1x8x32xf32> to vector<8x32xf32>
    %189 = vector.shape_cast %186 : vector<8x32xf32> to vector<1x8x32xf32>
    tpu.vector_store %arg19[%c0_81, %c0_82, %c0_83], %189 {strides = array<i32>} : memref<1x8x32xf32, #tpu.memory_space<vmem>>, vector<1x8x32xf32>,
    return
  }
  func.func @transform_0(%arg0: i32, %arg1: i32) -> (i32, i32, i32) {
    %c0_i32 = arith.constant 0 : i32
    %c0_i32_0 = arith.constant 0 : i32
    %c0_i32_1 = arith.constant 0 : i32
    return %arg0, %c0_i32, %c0_i32_0 : i32, i32, i32
  }
  func.func @transform_1(%arg0: i32, %arg1: i32) -> (i32, i32, i32) {
    %c0_i32 = arith.constant 0 : i32
    %c0_i32_0 = arith.constant 0 : i32
    %c0_i32_1 = arith.constant 0 : i32
    return %arg0, %c0_i32, %c0_i32_0 : i32, i32, i32
  }
  func.func @transform_2(%arg0: i32, %arg1: i32) -> (i32, i32, i32) {
    %c0_i32 = arith.constant 0 : i32
    %c0_i32_0 = arith.constant 0 : i32
    %c0_i32_1 = arith.constant 0 : i32
    return %arg0, %c0_i32, %c0_i32_0 : i32, i32, i32
  }
  func.func @transform_3(%arg0: i32, %arg1: i32) -> (i32, i32) {
    %c0_i32 = arith.constant 0 : i32
    %c0_i32_0 = arith.constant 0 : i32
    %c0_i32_1 = arith.constant 0 : i32
    return %c0_i32, %c0_i32_0 : i32, i32
  }
  func.func @transform_4(%arg0: i32, %arg1: i32) -> (i32, i32) {
    %c0_i32 = arith.constant 0 : i32
    %c0_i32_0 = arith.constant 0 : i32
    %c0_i32_1 = arith.constant 0 : i32
    return %c0_i32, %c0_i32_0 : i32, i32
  }
  func.func @transform_5(%arg0: i32, %arg1: i32) -> (i32, i32, i32) {
    %c0_i32 = arith.constant 0 : i32
    %c0_i32_0 = arith.constant 0 : i32
    %c0_i32_1 = arith.constant 0 : i32
    return %arg1, %c0_i32, %c0_i32_0 : i32, i32, i32
  }
  func.func @transform_6(%arg0: i32, %arg1: i32) -> (i32, i32, i32) {
    %c0_i32 = arith.constant 0 : i32
    %c0_i32_0 = arith.constant 0 : i32
    %c0_i32_1 = arith.constant 0 : i32
    return %arg1, %c0_i32, %c0_i32_0 : i32, i32, i32
  }
  func.func @transform_7(%arg0: i32, %arg1: i32) -> (i32, i32, i32) {
    %c0_i32 = arith.constant 0 : i32
    %c0_i32_0 = arith.constant 0 : i32
    %c0_i32_1 = arith.constant 0 : i32
    return %arg1, %c0_i32, %c0_i32_0 : i32, i32, i32
  }
  func.func @transform_8(%arg0: i32, %arg1: i32) -> (i32, i32, i32) {
    %c0_i32 = arith.constant 0 : i32
    %c0_i32_0 = arith.constant 0 : i32
    %c0_i32_1 = arith.constant 0 : i32
    return %arg1, %c0_i32, %c0_i32_0 : i32, i32, i32
  }
  func.func @transform_9(%arg0: i32, %arg1: i32) -> (i32, i32, i32) {
    %c0_i32 = arith.constant 0 : i32
    %c0_i32_0 = arith.constant 0 : i32
    %c0_i32_1 = arith.constant 0 : i32
    return %arg1, %c0_i32, %c0_i32_0 : i32, i32, i32
  }
  func.func @transform_10(%arg0: i32, %arg1: i32) -> (i32, i32, i32) {
    %c0_i32 = arith.constant 0 : i32
    %c0_i32_0 = arith.constant 0 : i32
    %c0_i32_1 = arith.constant 0 : i32
    return %arg1, %c0_i32, %c0_i32_0 : i32, i32, i32
  }
  func.func @transform_11(%arg0: i32, %arg1: i32) -> (i32, i32, i32) {
    %c0_i32 = arith.constant 0 : i32
    %c0_i32_0 = arith.constant 0 : i32
    %c0_i32_1 = arith.constant 0 : i32
    return %arg1, %c0_i32, %c0_i32_0 : i32, i32, i32
  }
  func.func @transform_12(%arg0: i32, %arg1: i32) -> (i32, i32, i32) {
    %c0_i32 = arith.constant 0 : i32
    %c0_i32_0 = arith.constant 0 : i32
    %c0_i32_1 = arith.constant 0 : i32
    return %arg1, %c0_i32, %c0_i32_0 : i32, i32, i32
  }
  func.func @transform_13(%arg0: i32, %arg1: i32) -> (i32, i32, i32) {
    %c0_i32 = arith.constant 0 : i32
    %c0_i32_0 = arith.constant 0 : i32
    %c0_i32_1 = arith.constant 0 : i32
    return %arg1, %c0_i32, %c0_i32_0 : i32, i32, i32
  }
  func.func @transform_14(%arg0: i32, %arg1: i32) -> (i32, i32, i32) {
    %c0_i32 = arith.constant 0 : i32
    %c0_i32_0 = arith.constant 0 : i32
    %c0_i32_1 = arith.constant 0 : i32
    return %arg1, %c0_i32, %c0_i32_0 : i32, i32, i32
  }
  func.func @transform_15(%arg0: i32, %arg1: i32) -> (i32, i32, i32) {
    %c0_i32 = arith.constant 0 : i32
    %c0_i32_0 = arith.constant 0 : i32
    %c0_i32_1 = arith.constant 0 : i32
    return %arg1, %c0_i32, %c0_i32_0 : i32, i32, i32
  }
  func.func @transform_16(%arg0: i32, %arg1: i32) -> (i32, i32, i32) {
    %c0_i32 = arith.constant 0 : i32
    %c0_i32_0 = arith.constant 0 : i32
    %c0_i32_1 = arith.constant 0 : i32
    return %arg1, %c0_i32, %c0_i32_0 : i32, i32, i32
  }
  func.func @transform_17(%arg0: i32, %arg1: i32) -> (i32, i32, i32) {
    %c0_i32 = arith.constant 0 : i32
    %c0_i32_0 = arith.constant 0 : i32
    %c0_i32_1 = arith.constant 0 : i32
    return %arg0, %c0_i32, %c0_i32_0 : i32, i32, i32
  }
}

</mosaic_0001>

<bundles_post_ra>
// kernel: tpu_custom_call.1
= control target key start
LH: loop header
LB: loop body
LE: loop exit
PB: predicated region body
PF: predicated region fallthrough
CT: control target
= control target key end

     0   :  { %s2862_s0 = inlined_call_operand.vmem [shape: f32[2,8,32], index: 0, kind: input, shape index: {}]   ;;  %s2863_s1 = inlined_call_operand.vmem [shape: f32[2,8,1], index: 1, kind: input, shape index: {}]   ;;  %s2864_s2 = inlined_call_operand.vmem [shape: f32[2,1,8], index: 2, kind: input, shape index: {}]   ;;  %s2865_s3 = inlined_call_operand.vmem [shape: f32[1,32], index: 3, kind: input, shape index: {}]   ;;  %s2866_s4 = inlined_call_operand.hbm [shape: f32[1,32], index: 4, kind: input, shape index: {}]   ;;  %s2867_s5 = inlined_call_operand.vmem [shape: bf16[2,32,96], index: 5, kind: input, shape index: {}]   ;;  %s2868_s6 = inlined_call_operand.vmem [shape: f32[2,1,96], index: 6, kind: input, shape index: {}]   ;;  %s2869_s7 = inlined_call_operand.vmem [shape: bf16[2,32,32], index: 7, kind: input, shape index: {}]   ;;  %s2870_s8 = inlined_call_operand.vmem [shape: f32[2,1,32], index: 8, kind: input, shape index: {}]   ;;  %s2871_s9 = inlined_call_operand.vmem [shape: f32[2,1,32], index: 9, kind: input, shape index: {}]   ;;  %s2872_s10 = inlined_call_operand.vmem [shape: f32[2,1,32], index: 10, kind: input, shape index: {}]   ;;  %s2873_s11 = inlined_call_operand.vmem [shape: bf16[2,32,64], index: 11, kind: input, shape index: {}]   ;;  %s2874_s12 = inlined_call_operand.vmem [shape: f32[2,1,64], index: 12, kind: input, shape index: {}]   ;;  %s2875_s13 = inlined_call_operand.vmem [shape: bf16[2,64,32], index: 13, kind: input, shape index: {}]   ;;  %s2876_s14 = inlined_call_operand.vmem [shape: f32[2,1,32], index: 14, kind: input, shape index: {}]   ;;  %s2877_s15 = inlined_call_operand.vmem [shape: f32[2,1,32], index: 15, kind: input, shape index: {}]   ;;  %s2878_s16 = inlined_call_operand.vmem [shape: f32[2,1,32], index: 16, kind: input, shape index: {}]   ;;  %s2879_s17 = inlined_call_operand.hbm [shape: f32[2,8,32], index: 17, kind: output, shape index: {}]  }
   0x1   :  { %2900 = sst [smem:[#allocation23_spill]] %s2862_s0 }
   0x2   :  { %2901 = sst [smem:[#allocation24_spill]] %s2863_s1 }
   0x3   :  { %2902 = sst [smem:[#allocation25_spill]] %s2865_s3 }
   0x4   :  { %2903 = sst [smem:[#allocation26_spill]] %s2866_s4 }
   0x5   :  { %2904 = sst [smem:[#allocation27_spill]] %s2867_s5 }
   0x6   :  { %2905 = sst [smem:[#allocation28_spill]] %s2869_s7 }
   0x7   :  { %2906 = sst [smem:[#allocation29_spill]] %s2871_s9 }
   0x8   :  { %2907 = sst [smem:[#allocation30_spill]] %s2872_s10 }
   0x9   :  { %2908 = sst [smem:[#allocation31_spill]] %s2873_s11 }
   0xa   :  { %2909 = sst [smem:[#allocation32_spill]] %s2876_s14 }
   0xb   :  { %2910 = sst [smem:[#allocation33_spill]] %s2877_s15 }
   0xc   :  { %2911 = sst [smem:[#allocation34_spill]] %s2878_s16 }
   0xd   :  { %2912 = sst [smem:[#allocation35_spill]] %s2879_s17 }
   0xe   :  { %22 = vsyncpa [#allocation4], 0 }
   0xf   :  { %23 = vsyncpa [#allocation5], 0 }
  0x10   :  { %25 = vsyncpa [#allocation5 + $0x1], 0  ;;  %s2459_s24 = smov 0   ;;  %s2461_s25 = smov 0  }
  0x11   :  { %s2463_s26 = smov 0   ;;  %s2465_s27 = smov 0  }
  0x12   :  { %s2467_s28 = smov 0   ;;  %s2469_s29 = smov 0  }
  0x13   :  { %s2471_s0 = smov 0   ;;  %s2473_s30 = smov 0  }
  0x14 LB: > { %2913 = sst [smem:[#allocation9_spill]] %s2320_s24  ;;  %s1907_s18 = sadd.s32 4294967295, %s2348_s30   ;;  %s2348_s30 = sphi %s2473_s30, %s31_s30   ;;  %s2344_s0 = sphi %s2471_s0, %s2975_s0   ;;  %s2340_s29 = sphi %s2469_s29, %s2974_s29   ;;  %s2336_s28 = sphi %s2467_s28, %s2973_s28   ;;  %s2332_s27 = sphi %s2465_s27, %s2972_s27   ;;  %s2328_s26 = sphi %s2463_s26, %s2971_s26   ;;  %s2324_s25 = sphi %s2461_s25, %s2970_s25   ;;  %s2320_s24 = sphi %s2459_s24, %s2969_s24  }
  0x15   : > { %2914 = sst [smem:[#allocation10_spill]] %s2324_s25  ;;  %s1908_s19 = sadd.s32 4294967294, %s2348_s30  }
  0x16   : > { %2915 = sst [smem:[#allocation11_spill]] %s2328_s26  ;;  %s40_s1 = sadd.s32 1, %s2340_s29 }
  0x17   : > { %2916 = sst [smem:[#allocation12_spill]] %s2332_s27  ;;  %s43_s20 = sadd.s32 1, %s2344_s0 }
  0x18   : > { %2917 = sst [smem:[#allocation13_spill]] %s2336_s28  ;;  %p41_p0 = scmp.ge.s32.totalorder %s40_s1, 2 }
  0x19   : > { %2918 = sst [smem:[#allocation14_spill]] %s2340_s29  ;;  %s482_s21 = sadd.s32 1, %s2328_s26 }
  0x1a   : > { %2919 = sst [smem:[#allocation15_spill]] %s2344_s0  ;;  %p492_p1 = scmp.ne.s32.totalorder %s2328_s26, %s2324_s25 }
  0x1b   : > { %2920 = sst [smem:[#allocation16_spill]] %s2348_s30  ;;  %p493_p2 = scmp.eq.s32.totalorder %s1907_s18, 3 }
  0x1c   : > { %s2977_s1 = smov (%p41_p0, %s40_s1), 0  ;;  %s2979_s20 = smov (!%p41_p0, %s43_s20), %s2344_s0 }
  0x1d   : > { %2921 = sst [smem:[#allocation17_spill]] %s2977_s1  ;;  %p2509_p3 = por %p493_p2, %p492_p1 }
  0x1e   : > { %p498_p4 = scmp.ne.s32.totalorder %s2324_s25, %s2320_s24  ;;  %p45_p5 = scmp.ge.s32.totalorder %s2979_s20, 2 }
  0x1f   : > { %s2922_s22 = scalar_select %p2509_p3, 1, 0 }
  0x20   : > { %p499_p6 = scmp.eq.s32.totalorder %s1908_s19, 3  ;;  %p1909_p7 = scmp.ge.s32.totalorder %s2348_s30, 1 }
  0x21   : > { %2923 = sst [smem:[#allocation18_spill]] %s2922_s22  ;;  %p506_p8 = scmp.lt.s32.totalorder %s2348_s30, 5 }
  0x22   : > { %s2981_s20 = smov (%p45_p5, %s2979_s20), 0  ;;  %p2519_p9 = por %p499_p6, %p498_p4 }
  0x23   : > { %2924 = sst [smem:[#allocation19_spill]] %s2981_s20  ;;  %p2523_p10 = pnand %p1909_p7, %p506_p8 }
  0x24   : > { %s2925_s23 = scalar_select %p2519_p9, 1, 0 }
  0x25   : > { %s2927_s29 = scalar_select %p2523_p10, 1, 0 }
  0x26   : > { %2926 = sst [smem:[#allocation20_spill]] %s2925_s23  ;;  %s479_s1 = ssub.s32 %s2344_s0, %s2981_s20 }
  0x27   : > { %p480_p11 = scmp.eq.s32.totalorder %s479_s1, 0  ;;  %p2093_p12 = pneg %p2523_p10 }
  0x28   : > { %p2531_p13 = scmp.eq.s32.totalorder %s1907_s18, 0  ;;  %s2350_s30 = smov [#allocation3]  }
  0x29   : > { %s2536_s24 = scalar_select %p480_p11, %s2328_s26, %s482_s21  }
  0x2a   : > { %s2928_s19 = scalar_select %p2531_p13, 1, 0 }
  0x2b   : > { %2929 = sst [smem:[#allocation21_spill]] %s2536_s24  ;;  %s522_s17 = sshll.u32 %s2350_s30, 4  ;;  %s523_s17 = int_to_ptr.vmem [resolvable:$true] %s522_s17 }
  0x2c   : > { %p2540_p0 = pnand %p2531_p13, %p2093_p12  ;;  %s2931_s4 = sld [smem:[#allocation26_spill]] }
  0x2e   : > { %p2224_p2 = pneg %p2540_p0 }
  0x32   : > { %s2222_s0 = scalar_lea.hbm %s2931_s4, 16 }
  0x33   : > { %p2223_p1 = scmp.ne.s32.totalorder %s2931_s4, %s2222_s0  ;;  %p2229_p6 = scmp.lt.u32.totalorder %s2222_s0, %s2931_s4 }
  0x35   : > { %p2225_p4 = pnand %p2224_p2, %p2223_p1 }
  0x37   : > { %p2226_p5 = pneg %p2225_p4 }
  0x39   : > { %p2231_p7 = pnand %p2229_p6, %p2226_p5 }
  0x3b   : > { %2234 = shalt.err (!%p2231_p7)
}
  0x3c   : > { %s2235_s24 = scalar_lea.vmem %s523_s17, 16  ;;  %s2242_s20 = scalar_lea.vmem %s523_s17, 32 }
  0x3d   : > { %p2236_p8 = scmp.ne.s32.totalorder %s523_s17, %s2235_s24  ;;  %p2243_p9 = scmp.lt.s32.totalorder %s523_s17, %s523_s17 }
  0x3e   : > { %p2244_p3 = scmp.lt.s32.totalorder %s2242_s20, %s2235_s24 }
  0x3f   : > { %p2238_p11 = pnand %p2236_p8, %p2224_p2 }
  0x40   : > { %p2245_p13 = por %p2244_p3, %p2243_p9 }
  0x41   : > { %p2239_p12 = pneg %p2238_p11 }
  0x43   : > { %p2246_p10 = pnand %p2245_p13, %p2239_p12 }
  0x45   : > { %2249 = shalt.err (!%p2246_p10)
}
  0x46   : > { %2096 = dma.hbm_to_vmem [thread:$0]  (!%p2540_p0), %s2931_s4, 16, %s523_s17, [#allocation4]  }
  0x47   : > { %p2932_p1 = scmp.ne.s32.totalorder %s2927_s29, 0 }
  0x49   : > { %635 = sbr.rel (%p2932_p1) target bundleno = 3001 (0xbb9), region = 88 }
  0x50   : > { %p2933_p4 = scmp.ne.s32.totalorder %s2928_s19, 0 }
  0x52   : > { %2311 = dma.done.wait (%p2933_p4), [#allocation4], 16  }
  0x53   : > { %2313 = vsyncadd (%p2933_p4), [#allocation4], 4294967280  ;;  %s2894_s24 = sand.u32 1, %s2324_s25   ;;  %p737_p3 = scmp.lt.s32.totalorder %s2336_s28, 1 }
  0x54   : > { %s1914_s0 = sshll.u32 %s2894_s24, 3  ;;  %p748_p9 = scmp.lt.s32.totalorder %s2332_s27, 1 }
  0x55   : > { %s2572_s17 = scalar_select %p737_p3, %s2336_s28, 1 }
  0x56   : > { %s2575_s29 = scalar_select %p748_p9, %s2332_s27, 1 }
  0x57   : > { %s1915_s23 = sshll.u32 %s2572_s17, 3  ;;  %s2934_s22 = sld [smem:[#allocation23_spill]] }
  0x58   : > { %s2935_s26 = sld [smem:[#allocation24_spill]]  ;;  %s1966_s28 = sshll.u32 %s2575_s29, 4 }
  0x59   : > { %s2936_s5 = sld [smem:[#allocation27_spill]]  ;;  %s2937_s7 = sld [smem:[#allocation28_spill]] }
  0x5a   : > { %s2941_s11 = sld [smem:[#allocation31_spill]]  ;;  %s2943_s10 = sld [smem:[#allocation33_spill]] }
  0x5b   : > { %s2642_s30 = scalar_lea.vmem [#allocation6], %s1914_s0  ;;  %s2945_s18 = sld [smem:[#allocation12_spill]] }
  0x5d   : > { %s740_s1 = scalar_lea.vmem %s2934_s22, %s1915_s23 }
  0x5e   : > { %s744_s25 = scalar_lea.vmem %s2935_s26, %s1915_s23  ;;  %s2942_s23 = sld [smem:[#allocation32_spill]] }
  0x5f   : > { %s2596_s19 = scalar_lea.vmem %s2936_s5, %s1966_s28  ;;  %s2601_s21 = scalar_lea.vmem %s2937_s7, %s1966_s28 }
  0x60   : > { %2938 = sst [smem:[#allocation22_spill]] %s2601_s21  ;;  %s2618_s5 = scalar_lea.vmem %s2941_s11, %s1966_s28 }
  0x61   : > { %s777_s7 = scalar_lea.vmem %s2874_s12, %s2575_s29  ;;  %s1969_s21 = sshll.u32 %s2575_s29, 5 }
  0x62   : > { %s2628_s4 = scalar_lea.vmem %s2875_s13, %s1969_s21  ;;  %s788_s14 = scalar_lea.vmem %s2943_s10, %s2575_s29 }
  0x63   : > { %s2944_s11 = sld [smem:[#allocation34_spill]]  ;;  %p1925_p10 = scmp.ne.s32.totalorder %s2945_s18, 0 }
  0x64   : > { %s785_s3 = scalar_lea.vmem %s2942_s23, %s2575_s29  ;;  %v797_v0 = vld [vmem:[%s740_s1] sm:$0xff] (!%p1925_p10)  ;;  %vm800_vm0 = vcmask (!%p1925_p10), 261120   ;;  %v2351_v3 = vmov (!%p1925_p10), 0   ;;  %s2946_s16 = sld [smem:[#allocation25_spill]] (!%p1925_p10) }
  0x65   : > { %796 = sbr.rel (%p1925_p10) target bundleno = 417 (0x1a1), region = 96  ;;  %v801_v1 = vsel (!%p1925_p10), %vm800_vm0, %v797_v0, 0.0  ;;  %v829_v2 = vld [vmem:[%s744_s25] sm:$0xff] (!%p1925_p10)  ;;  %2186 = vset.pattern.permute.xlu1 (!%p1925_p10), %v2351_v3  ;;  %2187 = vset.pattern.permute.xlu0 (!%p1925_p10), %v2351_v3 }
  0x66   : > { %802 = vadd.xlane.f32.xlu0 (!%p1925_p10), %v801_v1  ;;  %832 = vperm.xlu1 (!%p1925_p10), %2186, %v829_v2   ;;  %v1927_v15 = vld [vmem:[#allocation3] ss:$0 sm:$0xff] (!%p1925_p10) }
  0x69   : > { %s791_s9 = scalar_lea.vmem %s2944_s11, %s2575_s29 }
  0x6a   : > { %v1926_v13 = vld [vmem:[%s2946_s16] ss:$0 sm:$0xff] (!%p1925_p10) }
  0xe5   : > { %v833_v17 = vpop.permute.xlu1 %832 }
  0xf3   : > { %v803_v4 = vpop.xlane.xlu0 %802 }
  0xf4   : > { %v805_v5 = vmul.f32 0.03125, %v803_v4 }
  0xf6   : > { %v806_v6 = vsub.f32 %v797_v0, %v805_v5 }
  0xf8   : > { %v807_v7 = vmul.f32 %v806_v6, %v806_v6 }
  0xfa   : > { %v808_v8 = vsel %vm800_vm0, %v807_v7, 0.0 }
  0xfb   : > { %809 = vadd.xlane.f32.xlu0 %v808_v8 }
 0x188   : > { %v810_v9 = vpop.xlane.xlu0 %809 }
 0x189   : > { %v811_v10 = vmul.f32 0.03125, %v810_v9 }
 0x18b   : > { %v812_v11 = vadd.f32 1e-05, %v811_v10 }
 0x18d   : > { %2188 = vrsqrt.f32 %v812_v11 }
 0x197   : > { %v2189_v12 = vpop.eup %2188 }
 0x198   : > { %v814_v14 = vmul.f32 %v2189_v12, %v806_v6 }
 0x19a   : > { %v821_v16 = vmul.f32 %v1926_v13, %v814_v14 }
 0x19c   : > { %v828_v18 = vadd.f32 %v1927_v15, %v821_v16 }
 0x19e   : > { %v835_v19 = vmul.f32 %v833_v17, %v828_v18 }
 0x1a0   : > { %836 = vst.msk [vmem:[%s2642_s30] sm:$0xff] %vm800_vm0, %v835_v19 }
 0x1a1 PF: > { %v2190_v20 = vld [vmem:[%s2596_s19] sm:$0xff]   ;;  %v2352_v21 = vmov 0.0   ;;  %v2191_v22 = vld [vmem:[%s2596_s19 + $0x8] sm:$0xff]   ;;  %vm2353_vm1 = vmmov 0   ;;  %vm863_vm2 = vcmask 261120   ;;  %s2947_s1 = scalar_lea.vmem %s2868_s6, %s2575_s29  ;;  %s2354_s19 = smov 120  }
 0x1a2   : > { %2003 = vmatprep.subr.bf16.mxu0 %v2352_v21  ;;  %2011 = vmatprep.subr.bf16.mxu1 %v2352_v21  ;;  %v1928_v25 = vld [vmem:[%s2947_s1] ss:$0 sm:$0xff]  ;;  %s2355_s21 = smov 96   ;;  %s2356_s23 = smov 80   ;;  %vm917_vm3 = vcmask 64512   ;;  %vm981_vm4 = vcmask 1043456  }
 0x1a3   : > { %2004 = vmatpush3.bf16.msra.mxu0 %v2190_v20  ;;  %2007 = vmatprep.mubr.msk.bf16.mxu0 %vm2353_vm1, %v2352_v21  ;;  %s2357_s20 = smov 88   ;;  %s2358_s22 = smov 72   ;;  %vm1026_vm5 = vcmask 60416   ;;  %vm1145_vm6 = vcmask 126016   ;;  %vm1264_vm7 = vcmask 191616   ;;  %vm1383_vm8 = vcmask 257216  }
 0x1a4   : > { %2005 = vmatprep.subr.bf16.mxu0 %v2352_v21  ;;  %2013 = vmatprep.mubr.msk.bf16.mxu1 %vm2353_vm1, %v2352_v21  ;;  %s2359_s26 = smov 112   ;;  %s2360_s24 = smov 104   ;;  %vm1595_vm9 = vcmask 523264  }
 0x1a5   : > { %s2948_s15 = scalar_lea.vmem %s2864_s2, %s2572_s17  ;;  %s2361_s17 = smov 56  }
 0x1a6   : > { %v1932_v43 = vld [vmem:[%s2948_s15] ss:$0 sm:$0xff]  ;;  %s2362_s18 = smov 64   ;;  %s2363_s10 = smov 40  }
 0x1a7   : > { %v2659_v23 = vld [vmem:[%s2642_s30] sm:$0xff]  ;;  %2006 = vmatpush3.bf16.msra.mxu0 %v2191_v22  ;;  %s2364_s11 = smov 48   ;;  %s2949_s16 = sld [smem:[#allocation22_spill]] }
 0x1a8   : > { %v839_v24 = vpack.c.bf16 %v2659_v23, %v2659_v23  ;;  %2017 = vmatprep.subr.bf16.mxu0 %v2352_v21  ;;  %s2365_s25 = smov 8   ;;  %s2366_s0 = smov 16  }
 0x1a9   : > { %s2367_s1 = smov 24   ;;  %s2953_s15 = sld [smem:[#allocation30_spill]] }
 0x1aa   : > { %2008 = vmatmul.mubr.msk.bf16.vlgmr.msra.gmra.mrb[0].mxu0 %vm863_vm2, %v839_v24  ;;  %s2961_s27 = sld [smem:[#allocation35_spill]] }
 0x1ab   : > { %2019 = vmatprep.mubr.msk.bf16.mxu0 %vm2353_vm1, %v2352_v21 }
 0x27d   : > { %v901_v26 = vpop.f32.mrb[0].mxu0 }
 0x27e   : > { %v902_v27 = vadd.f32 %v1928_v25, %v901_v26  ;;  %v2009_v28 = vpop.f32.mrb[1].mxu0 }
 0x27f   : > { %v904_v29 = vpop.f32.mrb[2].mxu0 }
 0x280   : > { %v2675_v30 = vpack.c.bf16 %v902_v27, %v902_v27  ;;  %v2010_v31 = vpop.f32.mrb[3].mxu0 }
 0x282   : > { %1028 = vrot.lane.b32.xlu1 %v2675_v30, %s2354_s19  ;;  %915 = vrot.lane.b32.xlu0 %v2675_v30, %s2355_s21 }
 0x286   : > { %1149 = vrot.lane.b32.xlu1 %v2675_v30, %s2356_s23  ;;  %1030 = vrot.lane.b32.xlu0 %v2675_v30, %s2357_s20  ;;  %s2950_s23 = scalar_lea.vmem %s2870_s8, %s2575_s29 }
 0x28a   : > { %1268 = vrot.lane.b32.xlu1 %v2675_v30, %s2358_s22  ;;  %1147 = vrot.lane.b32.xlu0 %v2675_v30, %s2359_s26  ;;  %s2951_s26 = sld [smem:[#allocation29_spill]]  ;;  %s1684_s22 = sshll.u32 %s2642_s30, 4  ;;  %s2807_s22 = int_to_ptr.vmem [resolvable:$true] %s1684_s22 }
 0x28e   : > { %1266 = vrot.lane.b32.xlu0 %v2675_v30, %s2360_s24 }
 0x290   : > { %s2952_s24 = scalar_lea.vmem %s2951_s26, %s2575_s29 }
 0x2f4   : > { %v916_v32 = vpop.permute.xlu0 %915  ;;  %v1029_v35 = vpop.permute.xlu1 %1028 }
 0x2f5   : > { %v922_v33 = vsel %vm917_vm3, %v916_v32, 0 }
 0x2f6   : > { %2012 = vmatpush3.bf16.xpose.msra.mxu1 %v922_v33 }
 0x2f7   : > { %2023 = vmatprep.subr.bf16.mxu1 %v2352_v21 }
 0x2f8   : > { %v1031_v34 = vpop.permute.xlu0 %1030  ;;  %v1150_v37 = vpop.permute.xlu1 %1149 }
 0x2f9   : > { %v1036_v36 = vsel %vm917_vm3, %v1031_v34, 0  ;;  %v1155_v38 = vsel %vm917_vm3, %v1150_v37, 0 }
 0x2fc   : > { %v1269_v39 = vpop.permute.xlu1 %1268  ;;  %v1148_v40 = vpop.permute.xlu0 %1147 }
 0x2fd   : > { %2014 = vmatmul.mubr.msk.bf16.vlgmr.msra.gmra.mrb[0].mxu1 %vm917_vm3, %v2675_v30  ;;  %v1274_v41 = vsel %vm917_vm3, %v1269_v39, 0 }
 0x2fe   : > { %2024 = vmatpush3.bf16.xpose.msra.mxu1 %v1036_v36  ;;  %2025 = vmatprep.mubr.msk.bf16.mxu1 %vm2353_vm1, %v2352_v21 }
 0x2ff   : > { %2035 = vmatprep.subr.bf16.mxu1 %v2352_v21 }
 0x300   : > { %v1267_v42 = vpop.permute.xlu0 %1266 }
 0x305   : > { %2026 = vmatmul.mubr.msk.bf16.vlgmr.msra.gmra.mrb[4].mxu1 %vm917_vm3, %v1029_v35 }
 0x306   : > { %2036 = vmatpush3.bf16.xpose.msra.mxu1 %v1155_v38  ;;  %2037 = vmatprep.mubr.msk.bf16.mxu1 %vm2353_vm1, %v2352_v21 }
 0x307   : > { %2047 = vmatprep.subr.bf16.mxu1 %v2352_v21 }
 0x30d   : > { %2038 = vmatmul.mubr.msk.bf16.vlgmr.msra.gmra.mrb[8].mxu1 %vm917_vm3, %v1148_v40 }
 0x30e   : > { %2048 = vmatpush3.bf16.xpose.msra.mxu1 %v1274_v41  ;;  %2049 = vmatprep.mubr.msk.bf16.mxu1 %vm2353_vm1, %v2352_v21 }
 0x30f   : > { %2059 = vmatprep.subr.bf16.mxu1 %v2352_v21 }
 0x315   : > { %2050 = vmatmul.mubr.msk.bf16.vlgmr.msra.gmra.mrb[12].mxu1 %vm917_vm3, %v1267_v42 }
 0x316   : > { %2063 = vmatprep.mubr.msk.bf16.mxu1 %vm2353_vm1, %v2352_v21 }
 0x3d0   : > { %v958_v44 = vpop.f32.mrb[0].mxu1 }
 0x3d1   : > { %v959_v45 = vadd.f32 %v1932_v43, %v958_v44  ;;  %v2015_v46 = vpop.f32.mrb[1].mxu1 }
 0x3d2   : > { %v961_v47 = vpop.f32.mrb[2].mxu1 }
 0x3d3   : > { %v2016_v48 = vpop.f32.mrb[3].mxu1  ;;  %v964_v49 = vsel %vm917_vm3, %v959_v45, -inf }
 0x3d4   : > { %965 = vmax.xlane.f32.xlu1 %v964_v49 }
 0x3d8   : > { %v1072_v50 = vpop.f32.mrb[4].mxu1 }
 0x3d9   : > { %v1073_v51 = vadd.f32 %v1932_v43, %v1072_v50  ;;  %v2027_v52 = vpop.f32.mrb[5].mxu1 }
 0x3da   : > { %v1075_v53 = vpop.f32.mrb[6].mxu1 }
 0x3db   : > { %v2028_v54 = vpop.f32.mrb[7].mxu1  ;;  %v1078_v55 = vsel %vm917_vm3, %v1073_v51, -inf }
 0x3dc   : > { %1079 = vmax.xlane.f32.xlu0 %v1078_v55 }
 0x3e0   : > { %v1191_v56 = vpop.f32.mrb[8].mxu1 }
 0x3e1   : > { %v1192_v57 = vadd.f32 %v1932_v43, %v1191_v56  ;;  %v2039_v58 = vpop.f32.mrb[9].mxu1 }
 0x3e2   : > { %v1194_v59 = vpop.f32.mrb[10].mxu1 }
 0x3e3   : > { %v2040_v60 = vpop.f32.mrb[11].mxu1  ;;  %v1197_v61 = vsel %vm917_vm3, %v1192_v57, -inf }
 0x3e4   : > { %1198 = vmax.xlane.f32.xlu0 %v1197_v61  ;;  %v2192_v60 = vld [vmem:[%s2949_s16] sm:$0xff]   ;;  %v2193_v61 = vld [vmem:[%s2949_s16 + $0x8] sm:$0xff]   ;;  %s2958_s16 = sld [smem:[#allocation18_spill]] }
 0x3e5   : > { %2060 = vmatpush3.bf16.msra.mxu1 %v2192_v60 }
 0x3e6   : > { %2061 = vmatprep.subr.bf16.mxu1 %v2352_v21 }
 0x3e8   : > { %v1310_v62 = vpop.f32.mrb[12].mxu1 }
 0x3e9   : > { %v1311_v63 = vadd.f32 %v1932_v43, %v1310_v62  ;;  %v2051_v0 = vpop.f32.mrb[13].mxu1  ;;  %2062 = vmatpush3.bf16.msra.mxu1 %v2193_v61 }
 0x3ea   : > { %v1313_v1 = vpop.f32.mrb[14].mxu1  ;;  %2075 = vmatprep.subr.bf16.mxu1 %v2352_v21  ;;  %p2964_p0 = scmp.ne.s32.totalorder %s2958_s16, 0 }
 0x3eb   : > { %v2052_v2 = vpop.f32.mrb[15].mxu1  ;;  %v1316_v3 = vsel %vm917_vm3, %v1311_v63, -inf }
 0x3ec   : > { %1317 = vmax.xlane.f32.xlu1 %v1316_v3 }
 0x461   : > { %v966_v4 = vpop.xlane.xlu1 %965 }
 0x462   : > { %v967_v5 = vsub.f32 %v959_v45, %v966_v4 }
 0x464   : > { %v968_v6 = vmul.f32 1.442695, %v967_v5 }
 0x466   : > { %2200 = vpow2.f32 %v968_v6 }
 0x469   : > { %v1080_v7 = vpop.xlane.xlu0 %1079 }
 0x46a   : > { %v1081_v8 = vsub.f32 %v1073_v51, %v1080_v7 }
 0x46c   : > { %v1082_v9 = vmul.f32 1.442695, %v1081_v8 }
 0x46e   : > { %2202 = vpow2.f32 %v1082_v9 }
 0x470   : > { %v2201_v10 = vpop.eup %2200 }
 0x471   : > { %v1199_v11 = vpop.xlane.xlu0 %1198  ;;  %v970_v12 = vsel %vm917_vm3, %v2201_v10, 0.0 }
 0x472   : > { %v1200_v13 = vsub.f32 %v1192_v57, %v1199_v11  ;;  %971 = vadd.xlane.f32.xlu0 %v970_v12  ;;  %v1944_v12 = vld [vmem:[%s2950_s23] ss:$0 sm:$0xff] }
 0x474   : > { %v1201_v14 = vmul.f32 1.442695, %v1200_v13 }
 0x476   : > { %2204 = vpow2.f32 %v1201_v14 }
 0x478   : > { %v2203_v15 = vpop.eup %2202 }
 0x479   : > { %v1084_v16 = vsel %vm917_vm3, %v2203_v15, 0.0  ;;  %v1318_v19 = vpop.xlane.xlu1 %1317 }
 0x47a   : > { %1085 = vadd.xlane.f32.xlu1 %v1084_v16  ;;  %v1319_v20 = vsub.f32 %v1311_v63, %v1318_v19 }
 0x47c   : > { %v1320_v22 = vmul.f32 1.442695, %v1319_v20 }
 0x47e   : > { %2206 = vpow2.f32 %v1320_v22 }
 0x480   : > { %v2205_v17 = vpop.eup %2204 }
 0x481   : > { %v1203_v18 = vsel %vm917_vm3, %v2205_v17, 0.0 }
 0x482   : > { %1204 = vadd.xlane.f32.xlu0 %v1203_v18 }
 0x488   : > { %v2207_v24 = vpop.eup %2206 }
 0x489   : > { %v1322_v25 = vsel %vm917_vm3, %v2207_v24, 0.0 }
 0x48b   : > { %1090 = vrot.lane.b32.xlu1 %v2675_v30, %s2361_s17  ;;  %s2954_s17 = scalar_lea.vmem %s2953_s15, %s2575_s29  ;;  %s2962_s15 = smov %s2961_s27 }
 0x48c   : > { %s2250_s29 = scalar_lea.vmem %s2807_s22, 128 }
 0x48d   : > { %p2251_p13 = scmp.ne.s32.totalorder %s2807_s22, %s2250_s29 }
 0x48f   : > { %p2252_p2 = pnand %p2251_p13, %p2964_p0 }
 0x491   : > { %p2253_p5 = pneg %p2252_p2 }
 0x498   : > { %976 = vrot.lane.b32.xlu0 %v2675_v30, %s2362_s18 }
 0x49c   : > { %1328 = vrot.lane.b32.xlu0 %v2675_v30, %s2363_s10 }
 0x4af   : > { %1323 = vadd.xlane.f32.xlu1 %v1322_v25 }
 0x4c0   : > { %1209 = vrot.lane.b32.xlu1 %v2675_v30, %s2364_s11 }
 0x4ff   : > { %v972_v26 = vpop.xlane.xlu0 %971 }
 0x500   : > { %2208 = vrcp.f32 %v972_v26 }
 0x507   : > { %v1086_v27 = vpop.xlane.xlu1 %1085 }
 0x508   : > { %2210 = vrcp.f32 %v1086_v27  ;;  %v2194_v27 = vld [vmem:[%s2618_s5] sm:$0xff]  }
 0x50a   : > { %v2209_v28 = vpop.eup %2208 }
 0x50b   : > { %v974_v31 = vmul.f32 %v2209_v28, %v2201_v10  ;;  %v1091_v34 = vpop.permute.xlu1 %1090  ;;  %v2195_v28 = vld [vmem:[%s2618_s5 + $0x8] sm:$0xff]  }
 0x50c   : > { %v1096_v37 = vsel %vm981_vm4, %v1091_v34, 0 }
 0x50d   : > { %v975_v35 = vpack.c.bf16 %v974_v31, %v974_v31 }
 0x50f   : > { %v1205_v29 = vpop.xlane.xlu0 %1204 }
 0x510   : > { %2212 = vrcp.f32 %v1205_v29 }
 0x512   : > { %v2211_v36 = vpop.eup %2210 }
 0x513   : > { %v977_v32 = vpop.permute.xlu0 %976  ;;  %v1088_v30 = vmul.f32 %v2211_v36, %v2203_v15 }
 0x514   : > { %v983_v33 = vsel %vm981_vm4, %v977_v32, 0 }
 0x515   : > { %2018 = vmatpush3.bf16.msra.mxu0 %v983_v33  ;;  %v1089_v38 = vpack.c.bf16 %v1088_v30, %v1088_v30  ;;  %v1948_v33 = vld [vmem:[%s2952_s24] ss:$0 sm:$0xff] }
 0x516   : > { %2029 = vmatprep.subr.bf16.mxu0 %v2352_v21 }
 0x517   : > { %v1329_v44 = vpop.permute.xlu0 %1328 }
 0x518   : > { %2020 = vmatmul.mubr.msk.bf16.vlgmr.msra.gmra.mrb[4].mxu0 %vm917_vm3, %v975_v35  ;;  %v1334_v46 = vsel %vm981_vm4, %v1329_v44, 0  ;;  %v1949_v35 = vld [vmem:[%s2954_s17] ss:$0 sm:$0xff] }
 0x519   : > { %2030 = vmatpush3.bf16.msra.mxu0 %v1096_v37  ;;  %2031 = vmatprep.mubr.msk.bf16.mxu0 %vm2353_vm1, %v2352_v21 }
 0x51a   : > { %2041 = vmatprep.subr.bf16.mxu0 %v2352_v21  ;;  %v2213_v39 = vpop.eup %2212 }
 0x51b   : > { %v1207_v41 = vmul.f32 %v2213_v39, %v2205_v17  ;;  %v2197_v39 = vld [vmem:[%s2628_s4 + $0x8] sm:$0xff]  }
 0x51d   : > { %v1208_v45 = vpack.c.bf16 %v1207_v41, %v1207_v41  ;;  %v2199_v41 = vld [vmem:[%s2628_s4 + $0x18] sm:$0xff]  }
 0x520   : > { %2032 = vmatmul.mubr.msk.bf16.vlgmr.msra.gmra.mrb[8].mxu0 %vm917_vm3, %v1089_v38  ;;  %v2196_v38 = vld [vmem:[%s2628_s4] sm:$0xff]  }
 0x521   : > { %2043 = vmatprep.mubr.msk.bf16.mxu0 %vm2353_vm1, %v2352_v21 }
 0x53c   : > { %v1324_v40 = vpop.xlane.xlu1 %1323 }
 0x53d   : > { %2214 = vrcp.f32 %v1324_v40  ;;  %v2198_v40 = vld [vmem:[%s2628_s4 + $0x10] sm:$0xff]  }
 0x540   : > { %v1210_v42 = vpop.permute.xlu1 %1209 }
 0x541   : > { %v1215_v43 = vsel %vm981_vm4, %v1210_v42, 0  ;;  %v1950_v42 = vld [vmem:[%s777_s7] ss:$0 sm:$0xff]  ;;  %s2956_s7 = sld [smem:[#allocation13_spill]] }
 0x542   : > { %2042 = vmatpush3.bf16.msra.mxu0 %v1215_v43 }
 0x543   : > { %2053 = vmatprep.subr.bf16.mxu0 %v2352_v21 }
 0x545   : > { %2044 = vmatmul.mubr.msk.bf16.vlgmr.msra.gmra.mrb[12].mxu0 %vm917_vm3, %v1208_v45 }
 0x546   : > { %2054 = vmatpush3.bf16.msra.mxu0 %v1334_v46  ;;  %2055 = vmatprep.mubr.msk.bf16.mxu0 %vm2353_vm1, %v2352_v21 }
 0x547   : > { %v2215_v47 = vpop.eup %2214  ;;  %2067 = vmatprep.subr.bf16.mxu0 %v2352_v21  ;;  %s1963_s20 = sshll.u32 %s2956_s7, 7 }
 0x548   : > { %v1326_v48 = vmul.f32 %v2215_v47, %v2207_v24  ;;  %s2805_s28 = scalar_lea.hbm %s2961_s27, %s1963_s20 }
 0x54a   : > { %v1327_v49 = vpack.c.bf16 %v1326_v48, %v1326_v48 }
 0x54d   : > { %2056 = vmatmul.mubr.msk.bf16.vlgmr.msra.gmra.mrb[16].mxu0 %vm917_vm3, %v1327_v49 }
 0x54e   : > { %2071 = vmatprep.mubr.msk.bf16.mxu0 %vm2353_vm1, %v2352_v21  ;;  %2068 = vmatpush3.bf16.msra.mxu0 %v2194_v27 }
 0x54f   : > { %2069 = vmatprep.subr.bf16.mxu0 %v2352_v21 }
 0x552   : > { %2070 = vmatpush3.bf16.msra.mxu0 %v2195_v28 }
 0x5eb   : > { %v1019_v50 = vpop.f32.mrb[4].mxu0 }
 0x5ec   : > { %v1025_v51 = vpack.c.bf16 %v1019_v50, %v1019_v50  ;;  %v2021_v52 = vpop.f32.mrb[5].mxu0 }
 0x5ed   : > { %v1022_v53 = vpop.f32.mrb[6].mxu0 }
 0x5ee   : > { %1027 = vst.msk [vmem:[#allocation2] sm:$0xf] %vm1026_vm5, %v1025_v51  ;;  %v2022_v54 = vpop.f32.mrb[7].mxu0  ;;  %v1954_v53 = vld [vmem:[%s785_s3] ss:$0 sm:$0xff]  ;;  %s2957_s3 = sld [smem:[#allocation10_spill]] }
 0x5f3   : > { %v1132_v55 = vpop.f32.mrb[8].mxu0 }
 0x5f4   : > { %v1970_v56 = vpack.c.bf16 %v1132_v55, %v1132_v55  ;;  %v2033_v57 = vpop.f32.mrb[9].mxu0 }
 0x5f5   : > { %v1135_v58 = vpop.f32.mrb[10].mxu0 }
 0x5f6   : > { %1142 = vrot.lane.b32.xlu1 %v1970_v56, %s2365_s25  ;;  %v2034_v59 = vpop.f32.mrb[11].mxu0 }
 0x618   : > { %v1251_v62 = vpop.f32.mrb[12].mxu0 }
 0x619   : > { %v1971_v63 = vpack.c.bf16 %v1251_v62, %v1251_v62  ;;  %v2045_v0 = vpop.f32.mrb[13].mxu0 }
 0x61a   : > { %v1254_v1 = vpop.f32.mrb[14].mxu0 }
 0x61b   : > { %1261 = vrot.lane.b32.xlu0 %v1971_v63, %s2366_s0  ;;  %v2046_v2 = vpop.f32.mrb[15].mxu0 }
 0x620   : > { %v1370_v3 = vpop.f32.mrb[16].mxu0 }
 0x621   : > { %v1972_v4 = vpack.c.bf16 %v1370_v3, %v1370_v3  ;;  %v2057_v5 = vpop.f32.mrb[17].mxu0 }
 0x622   : > { %v1373_v6 = vpop.f32.mrb[18].mxu0 }
 0x623   : > { %1380 = vrot.lane.b32.xlu1 %v1972_v4, %s2367_s1  ;;  %v2058_v7 = vpop.f32.mrb[19].mxu0  ;;  %v1960_v6 = vld [vmem:[%s788_s14] ss:$0 sm:$0xff]  ;;  %s2963_s14 = sand.u32 1, %s2957_s3  }
 0x624   : > { %s1671_s17 = scalar_lea.sflag [#allocation5], %s2963_s14 }
 0x668   : > { %v1143_v8 = vpop.permute.xlu1 %1142 }
 0x669   : > { %1146 = vst.msk [vmem:[#allocation2] sm:$0xf] %vm1145_vm6, %v1143_v8  ;;  %v1961_v8 = vld [vmem:[%s791_s9] ss:$0 sm:$0xff]  ;;  %s2368_s9 = smov [#allocation6]  }
 0x66a   : > { %s2254_s5 = sshll.u32 %s2368_s9, 4  ;;  %s2255_s5 = int_to_ptr.vmem [resolvable:$false] %s2254_s5 }
 0x66b   : > { %s2256_s18 = scalar_lea.vmem %s2255_s5, 256  ;;  %p2257_p6 = scmp.lt.s32.totalorder %s2807_s22, %s2255_s5 }
 0x66c   : > { %p2258_p7 = scmp.lt.s32.totalorder %s2256_s18, %s2250_s29 }
 0x66e   : > { %p2259_p8 = por %p2258_p7, %p2257_p6 }
 0x670   : > { %p2260_p11 = pnand %p2259_p8, %p2253_p5 }
 0x68d   : > { %v1262_v9 = vpop.permute.xlu0 %1261 }
 0x68e   : > { %1265 = vst.msk [vmem:[#allocation2] sm:$0xf] %vm1264_vm7, %v1262_v9 }
 0x695   : > { %v1381_v10 = vpop.permute.xlu1 %1380 }
 0x696   : > { %1384 = vst.msk [vmem:[#allocation2] sm:$0xf] %vm1383_vm8, %v1381_v10 }
 0x69d   : > { %v1385_v11 = vld [vmem:[#allocation2] sm:$0xf] }
 0x69e   : > { %2064 = vmatmul.mubr.msk.bf16.vlgmr.msra.gmra.mrb[16].mxu1 %vm863_vm2, %v1385_v11 }
 0x69f   : > { %2083 = vmatprep.mubr.msk.bf16.mxu1 %vm2353_vm1, %v2352_v21  ;;  %2076 = vmatpush3.bf16.msra.mxu1 %v2196_v38 }
 0x6a0   : > { %2077 = vmatprep.subr.bf16.mxu1 %v2352_v21 }
 0x6a3   : > { %2078 = vmatpush3.bf16.msra.mxu1 %v2197_v39 }
 0x6a4   : > { %2079 = vmatprep.subr.bf16.mxu1 %v2352_v21 }
 0x6a7   : > { %2080 = vmatpush3.bf16.msra.mxu1 %v2198_v40 }
 0x6a8   : > { %2081 = vmatprep.subr.bf16.mxu1 %v2352_v21 }
 0x6ab   : > { %2082 = vmatpush3.bf16.msra.mxu1 %v2199_v41 }
 0x771   : > { %v1446_v13 = vpop.f32.mrb[16].mxu1 }
 0x772   : > { %v1447_v14 = vadd.f32 %v1944_v12, %v1446_v13  ;;  %v2065_v15 = vpop.f32.mrb[17].mxu1 }
 0x773   : > { %v1449_v16 = vpop.f32.mrb[18].mxu1 }
 0x774   : > { %v2066_v17 = vpop.f32.mrb[19].mxu1  ;;  %v1452_v18 = vadd.f32 %v1447_v14, %v2659_v23 }
 0x776   : > { %v1455_v19 = vsel %vm863_vm2, %v1452_v18, 0.0 }
 0x777   : > { %1456 = vadd.xlane.f32.xlu0 %v1455_v19 }
 0x804   : > { %v1457_v20 = vpop.xlane.xlu0 %1456 }
 0x805   : > { %v1459_v22 = vmul.f32 0.03125, %v1457_v20 }
 0x807   : > { %v1460_v24 = vsub.f32 %v1452_v18, %v1459_v22 }
 0x809   : > { %v1461_v25 = vmul.f32 %v1460_v24, %v1460_v24 }
 0x80b   : > { %v1462_v26 = vsel %vm863_vm2, %v1461_v25, 0.0 }
 0x80c   : > { %1463 = vadd.xlane.f32.xlu1 %v1462_v26 }
 0x899   : > { %v1464_v23 = vpop.xlane.xlu1 %1463 }
 0x89a   : > { %v1465_v29 = vmul.f32 0.03125, %v1464_v23 }
 0x89c   : > { %v1466_v31 = vadd.f32 1e-05, %v1465_v29 }
 0x89e   : > { %2216 = vrsqrt.f32 %v1466_v31 }
 0x8a8   : > { %v2217_v32 = vpop.eup %2216 }
 0x8a9   : > { %v1468_v34 = vmul.f32 %v2217_v32, %v1460_v24 }
 0x8ab   : > { %v1475_v36 = vmul.f32 %v1948_v33, %v1468_v34 }
 0x8ad   : > { %v1482_v37 = vadd.f32 %v1949_v35, %v1475_v36 }
 0x8af   : > { %v1483_v30 = vpack.c.bf16 %v1482_v37, %v1482_v37 }
 0x8b1   : > { %2072 = vmatmul.mubr.msk.bf16.vlgmr.msra.gmra.mrb[20].mxu0 %vm863_vm2, %v1483_v30 }
 0x984   : > { %v1544_v43 = vpop.f32.mrb[20].mxu0 }
 0x985   : > { %v1545_v44 = vadd.f32 %v1950_v42, %v1544_v43  ;;  %v2073_v45 = vpop.f32.mrb[21].mxu0 }
 0x986   : > { %v1547_v46 = vpop.f32.mrb[22].mxu0 }
 0x987   : > { %v1551_v47 = vmul.f32 0.70710677, %v1545_v44  ;;  %v2074_v48 = vpop.f32.mrb[23].mxu0  ;;  %v1550_v50 = vmul.f32 0.5, %v1545_v44 }
 0x989   : > { %2218 = verf.f32 %v1551_v47 }
 0x993   : > { %v2219_v49 = vpop.eup %2218 }
 0x994   : > { %v1553_v51 = vadd.f32 1.0, %v2219_v49 }
 0x996   : > { %v1554_v52 = vmul.f32 %v1553_v51, %v1550_v50 }
 0x998   : > { %v1555_v21 = vpack.c.bf16 %v1554_v52, %v1554_v52 }
 0x99a   : > { %2084 = vmatmul.mubr.msk.bf16.vlgmr.msra.gmra.mrb[20].mxu1 %vm1595_vm9, %v1555_v21 }
 0xa6d   : > { %v1633_v54 = vpop.f32.mrb[20].mxu1 }
 0xa6e   : > { %v1634_v55 = vadd.f32 %v1954_v53, %v1633_v54  ;;  %v2085_v56 = vpop.f32.mrb[21].mxu1 }
 0xa6f   : > { %v1636_v57 = vpop.f32.mrb[22].mxu1 }
 0xa70   : > { %v2086_v58 = vpop.f32.mrb[23].mxu1  ;;  %v1639_v59 = vadd.f32 %v1634_v55, %v1482_v37 }
 0xa72   : > { %v1642_v60 = vsel %vm863_vm2, %v1639_v59, 0.0 }
 0xa73   : > { %1643 = vadd.xlane.f32.xlu0 %v1642_v60 }
 0xb00   : > { %v1644_v61 = vpop.xlane.xlu0 %1643 }
 0xb01   : > { %v1645_v62 = vmul.f32 0.03125, %v1644_v61 }
 0xb03   : > { %v1646_v63 = vsub.f32 %v1639_v59, %v1645_v62 }
 0xb05   : > { %v1647_v0 = vmul.f32 %v1646_v63, %v1646_v63 }
 0xb07   : > { %v1648_v1 = vsel %vm863_vm2, %v1647_v0, 0.0 }
 0xb08   : > { %1649 = vadd.xlane.f32.xlu0 %v1648_v1 }
 0xb95   : > { %v1650_v2 = vpop.xlane.xlu0 %1649 }
 0xb96   : > { %v1651_v3 = vmul.f32 0.03125, %v1650_v2 }
 0xb98   : > { %v1652_v4 = vadd.f32 1e-05, %v1651_v3 }
 0xb9a   : > { %2220 = vrsqrt.f32 %v1652_v4 }
 0xba4   : > { %v2221_v5 = vpop.eup %2220 }
 0xba5   : > { %v1654_v7 = vmul.f32 %v2221_v5, %v1646_v63 }
 0xba7   : > { %v1661_v9 = vmul.f32 %v1960_v6, %v1654_v7 }
 0xba9   : > { %v1668_v10 = vadd.f32 %v1961_v8, %v1661_v9 }
 0xbab   : > { %1669 = vst.msk [vmem:[%s2642_s30] sm:$0xff] %vm863_vm2, %v1668_v10 }
 0xbac   : > { %2263 = shalt.err (!%p2260_p11)
}
 0xbad   : > { %s2264_s30 = scalar_lea.hbm %s2805_s28, 128  ;;  %s2268_s11 = scalar_lea.hbm %s2962_s15, 256 }
 0xbae   : > { %p2265_p12 = scmp.ne.s32.totalorder %s2805_s28, %s2264_s30  ;;  %p2269_p3 = scmp.lt.u32.totalorder %s2805_s28, %s2962_s15 }
 0xbaf   : > { %p2270_p9 = scmp.lt.u32.totalorder %s2268_s11, %s2264_s30  ;;  %p2272_p13 = scmp.lt.u32.totalorder %s2264_s30, %s2805_s28 }
 0xbb0   : > { %p2266_p1 = pnand %p2265_p12, %p2964_p0 }
 0xbb1   : > { %p2271_p10 = por %p2270_p9, %p2269_p3 }
 0xbb2   : > { %p2267_p4 = pneg %p2266_p1 }
 0xbb3   : > { %p2273_p2 = por %p2272_p13, %p2271_p10 }
 0xbb5   : > { %p2274_p5 = pnand %p2273_p2, %p2267_p4 }
 0xbb7   : > { %2277 = shalt.err (!%p2274_p5)
}
 0xbb8   : > { %2091 = dma.vmem_to_hbm [thread:$0]  (%p2964_p0), %s2807_s22, 128, %s2805_s28, %s1671_s17  }
 0xbb9 PF: > { %s2965_s25 = sld [smem:[#allocation16_spill]]  ;;  %s2966_s0 = sld [smem:[#allocation9_spill]] }
 0xbba   : > { %s2967_s1 = sld [smem:[#allocation20_spill]] }
 0xbbf   : > { %p2103_p6 = scmp.ge.s32.totalorder %s2965_s25, 2  ;;  %s1696_s19 = sand.u32 1, %s2966_s0  }
 0xbc0   : > { %p2968_p7 = scmp.ne.s32.totalorder %s2967_s1, 0  ;;  %s1697_s21 = scalar_lea.sflag [#allocation5], %s1696_s19 }
 0xbc2   : > { %p2098_p8 = pnand %p2103_p6, %p2968_p7 }
 0xbc4   : > { %2315 = dma.done.wait (!%p2098_p8), %s1697_s21, 128  }
 0xbc5   : > { %2317 = vsyncadd (!%p2098_p8), %s1697_s21, 4294967168  ;;  %s31_s30 = sadd.s32 1, %s2965_s25   ;;  %s2969_s24 = sld [smem:[#allocation10_spill]] }
 0xbc6   : > { %p28_p11 = scmp.ge.s32.totalorder %s31_s30, 6   ;;  %s2970_s25 = sld [smem:[#allocation11_spill]] }
 0xbc7   : > { %s2971_s26 = sld [smem:[#allocation21_spill]]  ;;  %s2972_s27 = sld [smem:[#allocation14_spill]] }
 0xbc8   : > { %s2973_s28 = sld [smem:[#allocation15_spill]]  ;;  %s2974_s29 = sld [smem:[#allocation17_spill]] }
 0xbc9   : > { %s2975_s0 = sld [smem:[#allocation19_spill]]  ;;  %30 = sbr.rel (!%p28_p11) target bundleno = 20 (0x14), region = 174 }
 0xbd0   :  { %1702 = vsyncpa [#allocation4], 1 }
 0xbd1   :  { %1704 = vsyncpa [#allocation4 + $0x1], 1 }
 0xbd2   :  { %1705 = vsyncpa [#allocation5], 1 }
 0xbd3   :  { %1707 = vsyncpa [#allocation5 + $0x1], 1 }

</bundles_post_ra>
